<compile_context>
chip_gen: v5e
topology: v5e:2x2
jax: 0.10.0
libtpu: 0.0.40
codegen_flags: <defaults>
</compile_context>

<pallas_src>
from functools import partial

import jax
import jax.numpy as jnp
from jax import lax
from jax.experimental import pallas as pl
from jax.experimental.pallas import tpu as pltpu

_EPS = 1e-12  # matches torch.nn.functional.normalize default eps


def _infonce_kernel(f1_ref, f2_ref, labc_ref, labr_ref, out_ref,
                    pos_acc, tot_acc, *, inv_temperature):
    k = pl.program_id(1)

    @pl.when(k == 0)
    def _init():
        pos_acc[...] = jnp.zeros_like(pos_acc)
        tot_acc[...] = jnp.zeros_like(tot_acc)

    f1 = f1_ref[...].astype(jnp.float32)          # (TQ, D)
    f2 = f2_ref[...].astype(jnp.float32)          # (TK, D)

    # F.normalize(x, p=2, dim=1) == x * (1 / max(||x||, eps))
    #                            == x * rsqrt(max(sum(x*x), eps^2))
    # rsqrt goes to the EUP slot; the 1/temperature factor is folded into the
    # row-side scale so the (TQ, TK) tile never sees an extra multiply/divide.
    s1 = lax.rsqrt(jnp.maximum(jnp.sum(f1 * f1, axis=1, keepdims=True),
                               _EPS * _EPS)) * inv_temperature      # (TQ, 1)
    s2 = lax.rsqrt(jnp.maximum(jnp.sum(f2 * f2, axis=1, keepdims=True),
                               _EPS * _EPS))                        # (TK, 1)
    n1 = f1 * s1
    n2 = f2 * s2

    # sim[q, c] = <n1[q], n2[c]>  (1/T already included).  Contract over D
    # without an explicit transpose.
    # NOTE: on v6e/v7x, casting n1/n2 to bf16 here (keeping f32 accumulation)
    # gives ~2-3x MXU throughput when the looser accuracy is acceptable; kept
    # f32 to preserve the 1e-5-level match with the reference.
    sim = lax.dot_general(n1, n2, (((1,), (1,)), ((), ())),
                          preferred_element_type=jnp.float32)       # (TQ, TK)

    # No max-shift needed: rows are L2-normalized so |sim| <= 1/T (~14.3 for
    # T=0.07) and exp stays comfortably inside f32 range.
    e = jnp.exp(sim)

    # Same-class mask from int32 label views; (1-mask) / neg_sum never built
    # since pos + neg == total.
    mask = labc_ref[...] == labr_ref[...]          # (TQ,1)==(1,TK) -> (TQ,TK)

    pos_acc[...] += jnp.sum(jnp.where(mask, e, 0.0), axis=1, keepdims=True)
    tot_acc[...] += jnp.sum(e, axis=1, keepdims=True)

    @pl.when(k == pl.num_programs(1) - 1)
    def _finalize():
        # -log(pos / total) == log(total) - log(pos)  (O(B) EUP work, once)
        out_ref[...] = jnp.log(tot_acc[...]) - jnp.log(pos_acc[...])


def infonce_loss(features1, features2, labels, temperature=0.07,
                 block_q=None, block_k=None):
    B, D = features1.shape
    assert features2.shape == (B, D)

    def _auto(blk):
        if blk is not None:
            return blk
        for cand in (256, 128):        # 256: MXU-native on v6e/v7x; 128: v5e
            if B % cand == 0:
                return cand
        return B                       # single-block fallback (always legal)

    tq = _auto(block_q)
    tk = _auto(block_k)
    assert B % tq == 0 and B % tk == 0, (B, tq, tk)
    # TODO(synk): for very large D, additionally block the D contraction.

    lab_col = labels.astype(jnp.int32).reshape(B, 1)
    lab_row = labels.astype(jnp.int32).reshape(1, B)

    per_row = pl.pallas_call(
        partial(_infonce_kernel, inv_temperature=1.0 / temperature),
        out_shape=jax.ShapeDtypeStruct((B, 1), jnp.float32),
        grid_spec=pltpu.PrefetchScalarGridSpec(
            num_scalar_prefetch=0,
            grid=(B // tq, B // tk),
            in_specs=[
                pl.BlockSpec((tq, D), lambda i, k: (i, 0)),   # f1 row tile
                pl.BlockSpec((tk, D), lambda i, k: (k, 0)),   # f2 col tile
                pl.BlockSpec((tq, 1), lambda i, k: (i, 0)),   # labels (column)
                pl.BlockSpec((1, tk), lambda i, k: (0, k)),   # labels (row)
            ],
            out_specs=pl.BlockSpec((tq, 1), lambda i, k: (i, 0)),
            scratch_shapes=[
                pltpu.VMEM((tq, 1), jnp.float32),   # pos accumulator
                pltpu.VMEM((tq, 1), jnp.float32),   # total accumulator
            ],
        ),
        compiler_params=pltpu.CompilerParams(
            dimension_semantics=("parallel", "arbitrary"),
            vmem_limit_bytes=32 * 1024 * 1024,   # above v5e's 16 MiB default
        ),
    )(features1, features2, lab_col, lab_row)

    # Mean over B per-row losses: trivial final reduce outside the kernel so
    # the row axis can stay "parallel" (megacore) with no scalar-write race.
    return jnp.mean(per_row)


def _infonce_ref(features1, features2, labels, temperature=0.07):
    # Pure-JAX reference matching the PyTorch module semantics.
    eps = 1e-12
    n1 = features1 / jnp.maximum(
        jnp.linalg.norm(features1, axis=1, keepdims=True), eps)
    n2 = features2 / jnp.maximum(
        jnp.linalg.norm(features2, axis=1, keepdims=True), eps)
    sim = n1 @ n2.T / temperature
    mask = (labels[:, None] == labels[None, :]).astype(jnp.float32)
    exp_sim = jnp.exp(sim)
    pos = jnp.sum(exp_sim * mask, axis=1)
    neg = jnp.sum(exp_sim * (1.0 - mask), axis=1)
    return jnp.mean(-jnp.log(pos / (pos + neg)))


if __name__ == "__main__":
    key = jax.random.PRNGKey(0)
    k1, k2, k3 = jax.random.split(key, 3)

    B, D = 256, 64
    features1 = jax.random.normal(k1, (B, D), dtype=jnp.float32)
    features2 = jax.random.normal(k2, (B, D), dtype=jnp.float32)
    labels = jax.random.randint(k3, (B,), 0, 4, dtype=jnp.int32)

    ref = _infonce_ref(features1, features2, labels, temperature=0.07)

    # Multi-tile grid (2x2): exercises online accumulation across column tiles
    # and accumulator init/finalize.
    loss_tiled = infonce_loss(features1, features2, labels, temperature=0.07,
                              block_q=128, block_k=128)
    loss_tiled = jax.block_until_ready(loss_tiled)
    assert jnp.allclose(loss_tiled, ref, rtol=1e-4, atol=1e-5), (loss_tiled, ref)

    # Default (auto) tiling: single 256-row/col block.
    loss_auto = infonce_loss(features1, features2, labels, temperature=0.07)
    loss_auto = jax.block_until_ready(loss_auto)
    assert jnp.allclose(loss_auto, ref, rtol=1e-4, atol=1e-5), (loss_auto, ref)

    print("KERNEL_OK")
</pallas_src>

<mosaic_0001>
module attributes {stable_mosaic.version = 11 : i64} {
  func.func @_infonce_kernel(%arg0: i32, %arg1: i32, %arg2: memref<128x64xf32, #tpu.memory_space<vmem>>, %arg3: memref<128x64xf32, #tpu.memory_space<vmem>>, %arg4: memref<128x1xi32, #tpu.memory_space<vmem>>, %arg5: memref<1x128xi32, #tpu.memory_space<vmem>>, %arg6: memref<128x1xf32, #tpu.memory_space<vmem>>, %arg7: memref<128x1xf32, #tpu.memory_space<vmem>>, %arg8: memref<128x1xf32, #tpu.memory_space<vmem>>) attributes {dimension_semantics = [#tpu.dimension_semantics<parallel>, #tpu.dimension_semantics<arbitrary>], iteration_bounds = array<i64: 2, 2>, scalar_prefetch = 0 : i64, scratch_operands = 2 : i64, tpu.core_type = #tpu.core_type<tc>, window_params = [{transform_indices = @transform_0, window_bounds = array<i64: 128, 64>}, {transform_indices = @transform_1, window_bounds = array<i64: 128, 64>}, {transform_indices = @transform_2, window_bounds = array<i64: 128, 1>}, {transform_indices = @transform_3, window_bounds = array<i64: 1, 128>}, {transform_indices = @transform_4, window_bounds = array<i64: 128, 1>}]} {
    %c0_i32 = arith.constant 0 : i32
    %0 = arith.cmpi eq, %arg1, %c0_i32 : i32
    %1 = arith.extui %0 : i1 to i32
    %c0_i32_0 = arith.constant 0 : i32
    %2 = arith.cmpi ne, %1, %c0_i32_0 : i32
    scf.if %2 {
      %cst_25 = arith.constant 0.000000e+00 : f32
      %45 = vector.broadcast %cst_25 : f32 to vector<128x1xf32>
      %c0_26 = arith.constant 0 : index
      %c0_27 = arith.constant 0 : index
      %46 = vector.load %arg7[%c0_26, %c0_27] : memref<128x1xf32, #tpu.memory_space<vmem>>, vector<128x1xf32>
      tpu.vector_store %arg7[%c0_26, %c0_27], %45 {strides = array<i32>} : memref<128x1xf32, #tpu.memory_space<vmem>>, vector<128x1xf32>,
      %cst_28 = arith.constant 0.000000e+00 : f32
      %47 = vector.broadcast %cst_28 : f32 to vector<128x1xf32>
      %c0_29 = arith.constant 0 : index
      %c0_30 = arith.constant 0 : index
      %48 = vector.load %arg8[%c0_29, %c0_30] : memref<128x1xf32, #tpu.memory_space<vmem>>, vector<128x1xf32>
      tpu.vector_store %arg8[%c0_29, %c0_30], %47 {strides = array<i32>} : memref<128x1xf32, #tpu.memory_space<vmem>>, vector<128x1xf32>,
    } else {
    }
    %c0 = arith.constant 0 : index
    %c0_1 = arith.constant 0 : index
    %3 = vector.load %arg2[%c0, %c0_1] : memref<128x64xf32, #tpu.memory_space<vmem>>, vector<128x64xf32>
    %c0_2 = arith.constant 0 : index
    %c0_3 = arith.constant 0 : index
    %4 = vector.load %arg3[%c0_2, %c0_3] : memref<128x64xf32, #tpu.memory_space<vmem>>, vector<128x64xf32>
    %5 = arith.mulf %3, %3 : vector<128x64xf32>
    %cst = arith.constant dense<0.000000e+00> : vector<128xf32>
    %6 = vector.multi_reduction <add>, %5, %cst [1] : vector<128x64xf32> to vector<128xf32>
    %7 = vector.shape_cast %6 : vector<128xf32> to vector<128x1xf32>
    %cst_4 = arith.constant 1.000000e-24 : f32
    %8 = vector.broadcast %cst_4 : f32 to vector<128x1xf32>
    %9 = arith.maximumf %7, %8 : vector<128x1xf32>
    %10 = math.rsqrt %9 : vector<128x1xf32>
    %cst_5 = arith.constant 14.2857141 : f32
    %11 = vector.broadcast %cst_5 : f32 to vector<128x1xf32>
    %12 = arith.mulf %10, %11 : vector<128x1xf32>
    %13 = arith.mulf %4, %4 : vector<128x64xf32>
    %cst_6 = arith.constant dense<0.000000e+00> : vector<128xf32>
    %14 = vector.multi_reduction <add>, %13, %cst_6 [1] : vector<128x64xf32> to vector<128xf32>
    %15 = vector.shape_cast %14 : vector<128xf32> to vector<128x1xf32>
    %cst_7 = arith.constant 1.000000e-24 : f32
    %16 = vector.broadcast %cst_7 : f32 to vector<128x1xf32>
    %17 = arith.maximumf %15, %16 : vector<128x1xf32>
    %18 = math.rsqrt %17 : vector<128x1xf32>
    %19 = vector.broadcast %12 : vector<128x1xf32> to vector<128x64xf32>
    %20 = arith.mulf %3, %19 : vector<128x64xf32>
    %21 = vector.broadcast %18 : vector<128x1xf32> to vector<128x64xf32>
    %22 = arith.mulf %4, %21 : vector<128x64xf32>
    %cst_8 = arith.constant dense<0.000000e+00> : vector<128x128xf32>
    %23 = tpu.matmul %20, %22, %cst_8 {dimension_numbers = #tpu.dot_dimension_numbers<[1], [1], [0], [0], [0, 0, 1, 0], [], []>} : vector<128x64xf32>, vector<128x64xf32>, vector<128x128xf32> -> vector<128x128xf32>
    %24 = math.exp %23 : vector<128x128xf32>
    %c0_9 = arith.constant 0 : index
    %c0_10 = arith.constant 0 : index
    %25 = vector.load %arg4[%c0_9, %c0_10] : memref<128x1xi32, #tpu.memory_space<vmem>>, vector<128x1xi32>
    %c0_11 = arith.constant 0 : index
    %c0_12 = arith.constant 0 : index
    %26 = vector.load %arg5[%c0_11, %c0_12] : memref<1x128xi32, #tpu.memory_space<vmem>>, vector<1x128xi32>
    %27 = vector.broadcast %25 : vector<128x1xi32> to vector<128x128xi32>
    %28 = vector.broadcast %26 : vector<1x128xi32> to vector<128x128xi32>
    %29 = arith.cmpi eq, %27, %28 : vector<128x128xi32>
    %c0_13 = arith.constant 0 : index
    %c0_14 = arith.constant 0 : index
    %30 = vector.load %arg7[%c0_13, %c0_14] : memref<128x1xf32, #tpu.memory_space<vmem>>, vector<128x1xf32>
    %cst_15 = arith.constant 0.000000e+00 : f32
    %31 = vector.broadcast %cst_15 : f32 to vector<128x128xf32>
    %32 = arith.select %29, %24, %31 : vector<128x128xi1>, vector<128x128xf32>
    %cst_16 = arith.constant dense<0.000000e+00> : vector<128xf32>
    %33 = vector.multi_reduction <add>, %32, %cst_16 [1] : vector<128x128xf32> to vector<128xf32>
    %34 = vector.shape_cast %33 : vector<128xf32> to vector<128x1xf32>
    %35 = arith.addf %30, %34 : vector<128x1xf32>
    %c0_17 = arith.constant 0 : index
    %c0_18 = arith.constant 0 : index
    %36 = vector.load %arg7[%c0_17, %c0_18] : memref<128x1xf32, #tpu.memory_space<vmem>>, vector<128x1xf32>
    tpu.vector_store %arg7[%c0_17, %c0_18], %35 {strides = array<i32>} : memref<128x1xf32, #tpu.memory_space<vmem>>, vector<128x1xf32>,
    %c0_19 = arith.constant 0 : index
    %c0_20 = arith.constant 0 : index
    %37 = vector.load %arg8[%c0_19, %c0_20] : memref<128x1xf32, #tpu.memory_space<vmem>>, vector<128x1xf32>
    %cst_21 = arith.constant dense<0.000000e+00> : vector<128xf32>
    %38 = vector.multi_reduction <add>, %24, %cst_21 [1] : vector<128x128xf32> to vector<128xf32>
    %39 = vector.shape_cast %38 : vector<128xf32> to vector<128x1xf32>
    %40 = arith.addf %37, %39 : vector<128x1xf32>
    %c0_22 = arith.constant 0 : index
    %c0_23 = arith.constant 0 : index
    %41 = vector.load %arg8[%c0_22, %c0_23] : memref<128x1xf32, #tpu.memory_space<vmem>>, vector<128x1xf32>
    tpu.vector_store %arg8[%c0_22, %c0_23], %40 {strides = array<i32>} : memref<128x1xf32, #tpu.memory_space<vmem>>, vector<128x1xf32>,
    %c1_i32 = arith.constant 1 : i32
    %42 = arith.cmpi eq, %arg1, %c1_i32 : i32
    %43 = arith.extui %42 : i1 to i32
    %c0_i32_24 = arith.constant 0 : i32
    %44 = arith.cmpi ne, %43, %c0_i32_24 : i32
    scf.if %44 {
      %c0_25 = arith.constant 0 : index
      %c0_26 = arith.constant 0 : index
      %45 = vector.load %arg8[%c0_25, %c0_26] : memref<128x1xf32, #tpu.memory_space<vmem>>, vector<128x1xf32>
      %46 = math.log %45 : vector<128x1xf32>
      %c0_27 = arith.constant 0 : index
      %c0_28 = arith.constant 0 : index
      %47 = vector.load %arg7[%c0_27, %c0_28] : memref<128x1xf32, #tpu.memory_space<vmem>>, vector<128x1xf32>
      %48 = math.log %47 : vector<128x1xf32>
      %49 = arith.subf %46, %48 : vector<128x1xf32>
      %c0_29 = arith.constant 0 : index
      %c0_30 = arith.constant 0 : index
      %50 = vector.load %arg6[%c0_29, %c0_30] : memref<128x1xf32, #tpu.memory_space<vmem>>, vector<128x1xf32>
      tpu.vector_store %arg6[%c0_29, %c0_30], %49 {strides = array<i32>} : memref<128x1xf32, #tpu.memory_space<vmem>>, vector<128x1xf32>,
    } else {
    }
    return
  }
  func.func @transform_0(%arg0: i32, %arg1: i32) -> (i32, i32) {
    %c0_i32 = arith.constant 0 : i32
    %c0_i32_0 = arith.constant 0 : i32
    return %arg0, %c0_i32 : i32, i32
  }
  func.func @transform_1(%arg0: i32, %arg1: i32) -> (i32, i32) {
    %c0_i32 = arith.constant 0 : i32
    %c0_i32_0 = arith.constant 0 : i32
    return %arg1, %c0_i32 : i32, i32
  }
  func.func @transform_2(%arg0: i32, %arg1: i32) -> (i32, i32) {
    %c0_i32 = arith.constant 0 : i32
    %c0_i32_0 = arith.constant 0 : i32
    return %arg0, %c0_i32 : i32, i32
  }
  func.func @transform_3(%arg0: i32, %arg1: i32) -> (i32, i32) {
    %c0_i32 = arith.constant 0 : i32
    %c0_i32_0 = arith.constant 0 : i32
    return %c0_i32, %arg1 : i32, i32
  }
  func.func @transform_4(%arg0: i32, %arg1: i32) -> (i32, i32) {
    %c0_i32 = arith.constant 0 : i32
    %c0_i32_0 = arith.constant 0 : i32
    return %arg0, %c0_i32 : i32, i32
  }
}

</mosaic_0001>

<bundles_post_ra>
// kernel: tpu_custom_call.1
= control target key start
LH: loop header
LB: loop body
LE: loop exit
PB: predicated region body
PF: predicated region fallthrough
CT: control target
= control target key end

     0   :  { %s1939_s15 = smov 0   ;;  %s1941_s16 = smov 0   ;;  %s3138_s0 = inlined_call_operand.vmem [shape: f32[256,64], index: 0, kind: input, shape index: {}]   ;;  %s3139_s1 = inlined_call_operand.vmem [shape: f32[256,64], index: 1, kind: input, shape index: {}]   ;;  %s3140_s2 = inlined_call_operand.vmem [shape: s32[256,1], index: 2, kind: input, shape index: {}]   ;;  %s3141_s3 = inlined_call_operand.vmem [shape: s32[1,256], index: 3, kind: input, shape index: {}]   ;;  %s3142_s4 = inlined_call_operand.vmem [shape: f32[256,1], index: 4, kind: output, shape index: {}]  }
   0x1   :  { %s1943_s17 = smov 0   ;;  %s1945_s18 = smov 0  }
   0x2   :  { %s1947_s19 = smov 0  }
   0x3 LB: > { %s23_s20 = sadd.s32 1, %s1902_s17  ;;  %s26_s21 = sadd.s32 1, %s1906_s18  ;;  %s1910_s19 = sphi %s1947_s19, %s14_s19   ;;  %s1906_s18 = sphi %s1945_s18, %s3207_s18   ;;  %s1902_s17 = sphi %s1943_s17, %s3206_s17   ;;  %s1898_s16 = sphi %s1941_s16, %s3205_s16   ;;  %s1894_s15 = sphi %s1939_s15, %s3204_s15  }
   0x4   : > { %p24_p0 = scmp.ge.s32.totalorder %s23_s20, 2  ;;  %p1558_p1 = scmp.ge.s32.totalorder %s1910_s19, 1 }
   0x5   : > { %p205_p2 = scmp.lt.s32.totalorder %s1910_s19, 5 }
   0x6   : > { %s3209_s20 = smov (%p24_p0, %s23_s20), 0  ;;  %s3211_s21 = smov (!%p24_p0, %s26_s21), %s1906_s18 }
   0x7   : > { %p206_p3 = pnand %p1558_p1, %p205_p2  ;;  %p28_p4 = scmp.ge.s32.totalorder %s3211_s21, 2 }
   0x8   : > { %s1559_s22 = sshll.u32 (!%p206_p3), %s1898_s16, 4  ;;  %s1561_s23 = sshll.u32 (!%p206_p3), %s1894_s15, 4 }
   0x9   : > { %s3213_s21 = smov (%p28_p4, %s3211_s21), 0  ;;  %209 = sbr.rel (%p206_p3) target bundleno = 645 (0x285), region = 36 }
   0xa   : > { %p245_p5 = scmp.lt.s32.totalorder (!%p206_p3), %s1559_s22, 31  ;;  %p251_p6 = scmp.lt.s32.totalorder (!%p206_p3), %s1561_s23, 31 }
   0xb   : > { %p262_p7 = scmp.lt.s32.totalorder (!%p206_p3), %s1894_s15, 1  ;;  %p1567_p8 = scmp.ne.s32.totalorder (!%p206_p3), %s1894_s15, 0 }
   0xe   : > { %s3215_s22 = smov (!%p245_p5, %s1559_s22), 31  ;;  %s3217_s23 = smov (!%p251_p6, %s1561_s23), 31 }
   0xf   : > { %s1560_s24 = sshll.u32 %s3215_s22, 3  ;;  %s1562_s28 = sshll.u32 %s3217_s23, 3 }
  0x10   : > { %s1976_s27 = scalar_lea.vmem %s3138_s0, %s1560_s24  ;;  %s1981_s5 = scalar_lea.vmem %s3139_s1, %s1562_s28 }
  0x11   : > { %s1986_s8 = scalar_lea.vmem %s3140_s2, %s1560_s24  ;;  %s1994_s12 = scalar_lea.vmem %s3142_s4, %s1560_s24 }
  0x12   : > { %s1989_s9 = scalar_select %p262_p7, %s1894_s15, 1 }
  0x13   : > { %274 = sbr.rel (%p1567_p8) target bundleno = 57 (0x39), region = 40 }
  0x14   : > { %s264_s16 = scalar_lea.vmem %s3141_s3, %s1989_s9 }
  0x18   : > { %vm275_vm0 = vcmask 7168   ;;  %v1912_v0 = vmov 0.0  }
  0x19   : > { %276 = vst.msk [vmem:[#allocation2] sm:$0xff] %vm275_vm0, %v1912_v0 }
  0x1a   : > { %277 = vst.msk [vmem:[#allocation2 + $0x8] sm:$0xff] %vm275_vm0, %v1912_v0 }
  0x1b   : > { %278 = vst.msk [vmem:[#allocation2 + $0x10] sm:$0xff] %vm275_vm0, %v1912_v0 }
  0x1c   : > { %279 = vst.msk [vmem:[#allocation2 + $0x18] sm:$0xff] %vm275_vm0, %v1912_v0 }
  0x1d   : > { %280 = vst.msk [vmem:[#allocation2 + $0x20] sm:$0xff] %vm275_vm0, %v1912_v0 }
  0x1e   : > { %281 = vst.msk [vmem:[#allocation2 + $0x28] sm:$0xff] %vm275_vm0, %v1912_v0 }
  0x1f   : > { %282 = vst.msk [vmem:[#allocation2 + $0x30] sm:$0xff] %vm275_vm0, %v1912_v0 }
  0x20   : > { %283 = vst.msk [vmem:[#allocation2 + $0x38] sm:$0xff] %vm275_vm0, %v1912_v0 }
  0x21   : > { %284 = vst.msk [vmem:[#allocation2 + $0x40] sm:$0xff] %vm275_vm0, %v1912_v0 }
  0x22   : > { %285 = vst.msk [vmem:[#allocation2 + $0x48] sm:$0xff] %vm275_vm0, %v1912_v0 }
  0x23   : > { %286 = vst.msk [vmem:[#allocation2 + $0x50] sm:$0xff] %vm275_vm0, %v1912_v0 }
  0x24   : > { %287 = vst.msk [vmem:[#allocation2 + $0x58] sm:$0xff] %vm275_vm0, %v1912_v0 }
  0x25   : > { %288 = vst.msk [vmem:[#allocation2 + $0x60] sm:$0xff] %vm275_vm0, %v1912_v0 }
  0x26   : > { %289 = vst.msk [vmem:[#allocation2 + $0x68] sm:$0xff] %vm275_vm0, %v1912_v0 }
  0x27   : > { %290 = vst.msk [vmem:[#allocation2 + $0x70] sm:$0xff] %vm275_vm0, %v1912_v0 }
  0x28   : > { %291 = vst.msk [vmem:[#allocation2 + $0x78] sm:$0xff] %vm275_vm0, %v1912_v0 }
  0x29   : > { %292 = vst.msk [vmem:[#allocation3] sm:$0xff] %vm275_vm0, %v1912_v0 }
  0x2a   : > { %293 = vst.msk [vmem:[#allocation3 + $0x8] sm:$0xff] %vm275_vm0, %v1912_v0 }
  0x2b   : > { %294 = vst.msk [vmem:[#allocation3 + $0x10] sm:$0xff] %vm275_vm0, %v1912_v0 }
  0x2c   : > { %295 = vst.msk [vmem:[#allocation3 + $0x18] sm:$0xff] %vm275_vm0, %v1912_v0 }
  0x2d   : > { %296 = vst.msk [vmem:[#allocation3 + $0x20] sm:$0xff] %vm275_vm0, %v1912_v0 }
  0x2e   : > { %297 = vst.msk [vmem:[#allocation3 + $0x28] sm:$0xff] %vm275_vm0, %v1912_v0 }
  0x2f   : > { %298 = vst.msk [vmem:[#allocation3 + $0x30] sm:$0xff] %vm275_vm0, %v1912_v0 }
  0x30   : > { %299 = vst.msk [vmem:[#allocation3 + $0x38] sm:$0xff] %vm275_vm0, %v1912_v0 }
  0x31   : > { %300 = vst.msk [vmem:[#allocation3 + $0x40] sm:$0xff] %vm275_vm0, %v1912_v0 }
  0x32   : > { %301 = vst.msk [vmem:[#allocation3 + $0x48] sm:$0xff] %vm275_vm0, %v1912_v0 }
  0x33   : > { %302 = vst.msk [vmem:[#allocation3 + $0x50] sm:$0xff] %vm275_vm0, %v1912_v0 }
  0x34   : > { %303 = vst.msk [vmem:[#allocation3 + $0x58] sm:$0xff] %vm275_vm0, %v1912_v0 }
  0x35   : > { %304 = vst.msk [vmem:[#allocation3 + $0x60] sm:$0xff] %vm275_vm0, %v1912_v0 }
  0x36   : > { %305 = vst.msk [vmem:[#allocation3 + $0x68] sm:$0xff] %vm275_vm0, %v1912_v0 }
  0x37   : > { %306 = vst.msk [vmem:[#allocation3 + $0x70] sm:$0xff] %vm275_vm0, %v1912_v0 }
  0x38   : > { %307 = vst.msk [vmem:[#allocation3 + $0x78] sm:$0xff] %vm275_vm0, %v1912_v0 }
  0x39 PF: > { %v2034_v1 = vld [vmem:[%s1981_s5 + $0x78] sm:$0xff]  ;;  %vm356_vm1 = vcmask 523264   ;;  %v2037_v2 = vld [vmem:[%s1981_s5 + $0x68] sm:$0xff]  ;;  %v2049_v7 = vld [vmem:[%s1981_s5 + $0x70] sm:$0xff]  ;;  %p1600_p9 = scmp.ne.s32.totalorder %s1894_s15, 1 }
  0x3a   : > { %v2040_v3 = vld [vmem:[%s1981_s5 + $0x58] sm:$0xff]  ;;  %v612_v4 = vmul.f32 %v2034_v1, %v2034_v1  ;;  %v610_v5 = vmul.f32 %v2037_v2, %v2037_v2  ;;  %v2052_v8 = vld [vmem:[%s1981_s5 + $0x60] sm:$0xff]  ;;  %v2058_v12 = vld [vmem:[%s1981_s5 + $0x50] sm:$0xff]  ;;  %v611_v13 = vmul.f32 %v2049_v7, %v2049_v7 }
  0x3b   : > { %v608_v6 = vmul.f32 %v2040_v3, %v2040_v3  ;;  %v609_v14 = vmul.f32 %v2052_v8, %v2052_v8  ;;  %v607_v15 = vmul.f32 %v2058_v12, %v2058_v12  ;;  %v2070_v19 = vld [vmem:[%s1981_s5 + $0x48] sm:$0xff]  ;;  %v2073_v20 = vld [vmem:[%s1981_s5 + $0x40] sm:$0xff]  ;;  %v2076_v21 = vld [vmem:[%s1981_s5 + $0x38] sm:$0xff] }
  0x3c   : > { %v658_v9 = vsel %vm356_vm1, %v612_v4, 0.0  ;;  %v652_v10 = vsel %vm356_vm1, %v610_v5, 0.0  ;;  %v655_v16 = vsel %vm356_vm1, %v611_v13, 0.0  ;;  %v606_v22 = vmul.f32 %v2070_v19, %v2070_v19  ;;  %v2088_v28 = vld [vmem:[%s1981_s5 + $0x30] sm:$0xff]  ;;  %v2091_v29 = vld [vmem:[%s1981_s5 + $0x28] sm:$0xff]  ;;  %v2094_v30 = vld [vmem:[%s1981_s5 + $0x20] sm:$0xff] }
  0x3d   : > { %v646_v11 = vsel %vm356_vm1, %v608_v6, 0.0  ;;  %659 = vadd.xlane.f32.xlu0 %v658_v9  ;;  %653 = vadd.xlane.f32.xlu1 %v652_v10  ;;  %v649_v17 = vsel %vm356_vm1, %v609_v14, 0.0  ;;  %v643_v18 = vsel %vm356_vm1, %v607_v15, 0.0  ;;  %v605_v23 = vmul.f32 %v2073_v20, %v2073_v20  ;;  %v2106_v37 = vld [vmem:[%s1981_s5 + $0x18] sm:$0xff]  ;;  %v2109_v38 = vld [vmem:[%s1981_s5 + $0x10] sm:$0xff]  ;;  %v2112_v39 = vld [vmem:[%s1981_s5 + $0x8] sm:$0xff] }
  0x3e   : > { %647 = vadd.xlane.f32.xlu2 %v646_v11  ;;  %v604_v24 = vmul.f32 %v2076_v21, %v2076_v21  ;;  %v640_v25 = vsel %vm356_vm1, %v606_v22, 0.0  ;;  %v603_v31 = vmul.f32 %v2088_v28, %v2088_v28  ;;  %v602_v32 = vmul.f32 %v2091_v29, %v2091_v29  ;;  %v2123_v45 = vld [vmem:[%s1981_s5] sm:$0xff]  ;;  %v317_v57 = vld [vmem:[%s1976_s27 + $0x48] sm:$0xff]  ;;  %v322_v15 = vld [vmem:[%s1976_s27 + $0x70] sm:$0xff] }
  0x3f   : > { %v637_v26 = vsel %vm356_vm1, %v605_v23, 0.0  ;;  %v601_v33 = vmul.f32 %v2094_v30, %v2094_v30  ;;  %v600_v40 = vmul.f32 %v2106_v37, %v2106_v37  ;;  %v599_v41 = vmul.f32 %v2109_v38, %v2109_v38  ;;  %v316_v47 = vld [vmem:[%s1976_s27 + $0x40] sm:$0xff]  ;;  %v309_v0 = vld [vmem:[%s1976_s27 + $0x8] sm:$0xff] }
  0x40   : > { %v634_v27 = vsel %vm356_vm1, %v604_v24, 0.0  ;;  %v631_v34 = vsel %vm356_vm1, %v603_v31, 0.0  ;;  %v628_v35 = vsel %vm356_vm1, %v602_v32, 0.0  ;;  %v598_v42 = vmul.f32 %v2112_v39, %v2112_v39  ;;  %v320_v48 = vld [vmem:[%s1976_s27 + $0x60] sm:$0xff]  ;;  %v321_v4 = vld [vmem:[%s1976_s27 + $0x68] sm:$0xff]  ;;  %v314_v31 = vld [vmem:[%s1976_s27 + $0x30] sm:$0xff] }
  0x41   : > { %v625_v36 = vsel %vm356_vm1, %v601_v33, 0.0  ;;  %v622_v43 = vsel %vm356_vm1, %v600_v40, 0.0  ;;  %v619_v44 = vsel %vm356_vm1, %v599_v41, 0.0  ;;  %v597_v49 = vmul.f32 %v2123_v45, %v2123_v45  ;;  %v2133_v54 = vld [vmem:[%s1976_s27] sm:$0xff]  ;;  %v313_v5 = vld [vmem:[%s1976_s27 + $0x28] sm:$0xff]  ;;  %v323_v32 = vld [vmem:[%s1976_s27 + $0x78] sm:$0xff] }
  0x42   : > { %v616_v46 = vsel %vm356_vm1, %v598_v42, 0.0  ;;  %v348_v50 = vmul.f32 %v316_v47, %v316_v47  ;;  %v352_v51 = vmul.f32 %v320_v48, %v320_v48  ;;  %v312_v56 = vld [vmem:[%s1976_s27 + $0x20] sm:$0xff]  ;;  %v340_v58 = vmul.f32 %v2133_v54, %v2133_v54  ;;  %v315_v42 = vld [vmem:[%s1976_s27 + $0x38] sm:$0xff] }
  0x43   : > { %v613_v52 = vsel %vm356_vm1, %v597_v49, 0.0  ;;  %v344_v59 = vmul.f32 %v312_v56, %v312_v56  ;;  %v349_v60 = vmul.f32 %v317_v57, %v317_v57  ;;  %v341_v6 = vmul.f32 %v309_v0, %v309_v0 }
  0x44   : > { %v381_v53 = vsel %vm356_vm1, %v348_v50, 0.0  ;;  %v393_v55 = vsel %vm356_vm1, %v352_v51, 0.0  ;;  %v357_v61 = vsel %vm356_vm1, %v340_v58, 0.0  ;;  %v353_v9 = vmul.f32 %v321_v4, %v321_v4 }
  0x45   : > { %656 = vadd.xlane.f32.xlu0 %v655_v16  ;;  %650 = vadd.xlane.f32.xlu1 %v649_v17  ;;  %v369_v62 = vsel %vm356_vm1, %v344_v59, 0.0  ;;  %v384_v63 = vsel %vm356_vm1, %v349_v60, 0.0  ;;  %v345_v10 = vmul.f32 %v313_v5, %v313_v5  ;;  %v360_v11 = vsel %vm356_vm1, %v341_v6, 0.0  ;;  %v318_v16 = vld [vmem:[%s1976_s27 + $0x50] sm:$0xff] }
  0x46   : > { %644 = vadd.xlane.f32.xlu2 %v643_v18  ;;  %v396_v13 = vsel %vm356_vm1, %v353_v9, 0.0  ;;  %v310_v17 = vld [vmem:[%s1976_s27 + $0x10] sm:$0xff]  ;;  %v354_v18 = vmul.f32 %v322_v15, %v322_v15  ;;  %v350_v22 = vmul.f32 %v318_v16, %v318_v16 }
  0x47   : > { %v372_v14 = vsel %vm356_vm1, %v345_v10, 0.0  ;;  %v342_v23 = vmul.f32 %v310_v17, %v310_v17 }
  0x48   : > { %v399_v24 = vsel %vm356_vm1, %v354_v18, 0.0 }
  0x4d   : > { %641 = vadd.xlane.f32.xlu0 %v640_v25  ;;  %638 = vadd.xlane.f32.xlu1 %v637_v26  ;;  %v387_v25 = vsel %vm356_vm1, %v350_v22, 0.0  ;;  %v363_v26 = vsel %vm356_vm1, %v342_v23, 0.0 }
  0x4e   : > { %635 = vadd.xlane.f32.xlu2 %v634_v27  ;;  %v319_v27 = vld [vmem:[%s1976_s27 + $0x58] sm:$0xff] }
  0x4f   : > { %v351_v33 = vmul.f32 %v319_v27, %v319_v27 }
  0x55   : > { %632 = vadd.xlane.f32.xlu0 %v631_v34  ;;  %629 = vadd.xlane.f32.xlu1 %v628_v35  ;;  %v346_v34 = vmul.f32 %v314_v31, %v314_v31  ;;  %v355_v35 = vmul.f32 %v323_v32, %v323_v32 }
  0x56   : > { %626 = vadd.xlane.f32.xlu2 %v625_v36  ;;  %v390_v36 = vsel %vm356_vm1, %v351_v33, 0.0 }
  0x57   : > { %v375_v40 = vsel %vm356_vm1, %v346_v34, 0.0  ;;  %v402_v41 = vsel %vm356_vm1, %v355_v35, 0.0 }
  0x5d   : > { %623 = vadd.xlane.f32.xlu0 %v622_v43  ;;  %620 = vadd.xlane.f32.xlu1 %v619_v44  ;;  %v311_v43 = vld [vmem:[%s1976_s27 + $0x18] sm:$0xff]  ;;  %v347_v44 = vmul.f32 %v315_v42, %v315_v42 }
  0x5e   : > { %617 = vadd.xlane.f32.xlu2 %v616_v46  ;;  %v343_v46 = vmul.f32 %v311_v43, %v311_v43 }
  0x5f   : > { %v378_v47 = vsel %vm356_vm1, %v347_v44, 0.0 }
  0x60   : > { %v366_v48 = vsel %vm356_vm1, %v343_v46, 0.0 }
  0x65   : > { %614 = vadd.xlane.f32.xlu0 %v613_v52  ;;  %382 = vadd.xlane.f32.xlu1 %v381_v53 }
  0x66   : > { %394 = vadd.xlane.f32.xlu2 %v393_v55 }
  0x6d   : > { %358 = vadd.xlane.f32.xlu0 %v357_v61  ;;  %370 = vadd.xlane.f32.xlu1 %v369_v62 }
  0x6e   : > { %385 = vadd.xlane.f32.xlu2 %v384_v63 }
  0x75   : > { %361 = vadd.xlane.f32.xlu1 %v360_v11  ;;  %397 = vadd.xlane.f32.xlu0 %v396_v13 }
  0x76   : > { %373 = vadd.xlane.f32.xlu2 %v372_v14 }
  0x7d   : > { %400 = vadd.xlane.f32.xlu1 %v399_v24  ;;  %388 = vadd.xlane.f32.xlu0 %v387_v25 }
  0x7e   : > { %364 = vadd.xlane.f32.xlu2 %v363_v26 }
  0x85   : > { %391 = vadd.xlane.f32.xlu1 %v390_v36  ;;  %376 = vadd.xlane.f32.xlu0 %v375_v40 }
  0x86   : > { %403 = vadd.xlane.f32.xlu2 %v402_v41 }
  0x8d   : > { %379 = vadd.xlane.f32.xlu1 %v378_v47  ;;  %367 = vadd.xlane.f32.xlu0 %v366_v48 }
  0xb0   : > { %v660_v49 = vpop.xlane.xlu0 %659  ;;  %v654_v50 = vpop.xlane.xlu1 %653 }
  0xb1   : > { %v676_v51 = vmax.f32 %v660_v49, 1e-24  ;;  %v2165_v52 = vmax.f32 %v654_v50, 1e-24  ;;  %v648_v53 = vpop.xlane.xlu2 %647 }
  0xb2   : > { %v2168_v55 = vmax.f32 %v648_v53, 1e-24 }
  0xb3   : > { %1697 = vrsqrt.f32 %v676_v51  ;;  %vm833_vm3 = vweird.f32 %v676_v51  ;;  %vm813_vm5 = vweird.f32 %v2165_v52 }
  0xb4   : > { %1699 = vrsqrt.f32 %v2165_v52  ;;  %vm793_vm13 = vweird.f32 %v2168_v55 }
  0xb5   : > { %1701 = vrsqrt.f32 %v2168_v55 }
  0xb8   : > { %v657_v56 = vpop.xlane.xlu0 %656  ;;  %v651_v57 = vpop.xlane.xlu1 %650 }
  0xb9   : > { %v1698_v58 = vpop.eup %1697  ;;  %v675_v59 = vmax.f32 %v657_v56, 1e-24  ;;  %v2171_v60 = vmax.f32 %v651_v57, 1e-24  ;;  %v645_v61 = vpop.xlane.xlu2 %644 }
  0xba   : > { %v2173_v62 = vpop.eup %1699  ;;  %v828_v63 = vmul.f32 %v1698_v58, %v676_v51  ;;  %v2175_v0 = vmax.f32 %v645_v61, 1e-24  ;;  %vm834_vm2 = vweird.f32 %v1698_v58 }
  0xbb   : > { %v808_v4 = vmul.f32 %v2173_v62, %v2165_v52  ;;  %1703 = vrsqrt.f32 %v675_v59  ;;  %v2181_v6 = vpop.eup %1701  ;;  %vm835_vm4 = vmor %vm833_vm3, %vm834_vm2  ;;  %vm814_vm7 = vweird.f32 %v2173_v62  ;;  %vm823_vm8 = vweird.f32 %v675_v59 }
  0xbc   : > { %v829_v5 = vmul.f32 %v1698_v58, %v828_v63  ;;  %1705 = vrsqrt.f32 %v2171_v60  ;;  %v788_v16 = vmul.f32 %v2181_v6, %v2168_v55  ;;  %vm803_vm10 = vweird.f32 %v2171_v60  ;;  %vm2234_vm12 = vmor %vm813_vm5, %vm814_vm7 }
  0xbd   : > { %1707 = vrsqrt.f32 %v2175_v0  ;;  %v809_v10 = vmul.f32 %v2173_v62, %v808_v4  ;;  %vm794_vm14 = vweird.f32 %v2181_v6  ;;  %vm783_vm2 = vweird.f32 %v2175_v0 }
  0xbe   : > { %v830_v9 = vmul.f32 0.5, %v829_v5  ;;  %v789_v34 = vmul.f32 %v2181_v6, %v788_v16  ;;  %vm2286_vm0 = vmor %vm793_vm13, %vm794_vm14 }
  0xbf   : > { %v810_v24 = vmul.f32 0.5, %v809_v10 }
  0xc0   : > { %v831_v11 = vsub.f32 1.5, %v830_v9  ;;  %v642_v13 = vpop.xlane.xlu0 %641  ;;  %v639_v14 = vpop.xlane.xlu1 %638  ;;  %v790_v50 = vmul.f32 0.5, %v789_v34 }
  0xc1   : > { %v1704_v15 = vpop.eup %1703  ;;  %v2186_v17 = vmax.f32 %v642_v13, 1e-24  ;;  %v636_v18 = vpop.xlane.xlu2 %635  ;;  %v2190_v26 = vmax.f32 %v639_v14, 1e-24  ;;  %v811_v36 = vsub.f32 1.5, %v810_v24 }
  0xc2   : > { %v2188_v22 = vpop.eup %1705  ;;  %v832_v23 = vmul.f32 %v1698_v58, %v831_v11  ;;  %v818_v25 = vmul.f32 %v1704_v15, %v675_v59  ;;  %v2202_v43 = vmax.f32 %v636_v18, 1e-24  ;;  %vm824_vm6 = vweird.f32 %v1704_v15 }
  0xc3   : > { %v2192_v27 = vpop.eup %1707  ;;  %v798_v31 = vmul.f32 %v2188_v22, %v2171_v60  ;;  %1709 = vrsqrt.f32 %v2186_v17  ;;  %vm825_vm9 = vmor %vm823_vm8, %vm824_vm6  ;;  %v791_v9 = vsub.f32 1.5, %v790_v50  ;;  %vm804_vm11 = vweird.f32 %v2188_v22 }
  0xc4   : > { %v836_v32 = vsel %vm835_vm4, %v1698_v58, %v832_v23  ;;  %v819_v33 = vmul.f32 %v1704_v15, %v818_v25  ;;  %v778_v41 = vmul.f32 %v2192_v27, %v2175_v0  ;;  %1711 = vrsqrt.f32 %v2190_v26  ;;  %vm2267_vm15 = vmor %vm803_vm10, %vm804_vm11 }
  0xc5   : > { %v799_v35 = vmul.f32 %v2188_v22, %v798_v31  ;;  %v868_v44 = vmul.f32 %v836_v32, %v2034_v1  ;;  %v812_v1 = vmul.f32 %v2173_v62, %v811_v36  ;;  %1713 = vrsqrt.f32 %v2202_v43 }
  0xc6   : > { %v820_v40 = vmul.f32 0.5, %v819_v33  ;;  %v779_v57 = vmul.f32 %v2192_v27, %v778_v41  ;;  %v792_v32 = vmul.f32 %v2181_v6, %v791_v9  ;;  %v1062_v41 = vld [vmem:[%s1986_s8] sm:$0xff]  ;;  %vm784_vm3 = vweird.f32 %v2192_v27 }
  0xc7   : > { %v800_v42 = vmul.f32 0.5, %v799_v35  ;;  %1568 = vmatpush.xpose.msk.msra.mxu0 %vm356_vm1, %v868_v44  ;;  %1603 = vmatpush.xpose.msk.msra.mxu1 %vm356_vm1, %v868_v44  ;;  %vm2308_vm4 = vmor %vm783_vm2, %vm784_vm3  ;;  %vm773_vm5 = vweird.f32 %v2186_v17  ;;  %vm763_vm6 = vweird.f32 %v2190_v26 }
  0xc8   : > { %v821_v46 = vsub.f32 1.5, %v820_v40  ;;  %v633_v47 = vpop.xlane.xlu0 %632  ;;  %v630_v48 = vpop.xlane.xlu1 %629  ;;  %1604 = vmatpush.xpose.msk.msra.mxu2 %vm356_vm1, %v868_v44  ;;  %1605 = vmatpush.xpose.msk.msra.mxu3 %vm356_vm1, %v868_v44  ;;  %v780_v11 = vmul.f32 0.5, %v779_v57  ;;  %v1913_v40 = vmov 0  }
  0xc9   : > { %v2206_v49 = vpop.eup %1709  ;;  %v2211_v51 = vmax.f32 %v633_v47, 1e-24  ;;  %v627_v53 = vpop.xlane.xlu2 %626  ;;  %v801_v58 = vsub.f32 1.5, %v800_v42  ;;  %v2222_v61 = vmax.f32 %v630_v48, 1e-24  ;;  %1693 = vset.pattern.permute.xlu2 %v1913_v40  ;;  %1695 = vset.pattern.permute.xlu1 %v1913_v40 }
  0xca   : > { %v822_v56 = vmul.f32 %v1704_v15, %v821_v46  ;;  %v768_v59 = vmul.f32 %v2206_v49, %v2186_v17  ;;  %v2224_v63 = vpop.eup %1711  ;;  %v2226_v5 = vmax.f32 %v627_v53, 1e-24  ;;  %v781_v34 = vsub.f32 1.5, %v780_v11  ;;  %1080 = vperm.xlu2 %1693, %v1062_v41   ;;  %1694 = vset.pattern.permute.xlu0 %v1913_v40 }
  0xcb   : > { %1715 = vrsqrt.f32 %v2211_v51  ;;  %v758_v13 = vmul.f32 %v2224_v63, %v2190_v26  ;;  %v802_v16 = vmul.f32 %v2188_v22, %v801_v58  ;;  %v2248_v18 = vpop.eup %1713  ;;  %v796_v53 = vsel %vm2286_vm0, %v2181_v6, %v792_v32 }
  0xcc   : > { %v826_v4 = vsel %vm825_vm9, %v1704_v15, %v822_v56  ;;  %1717 = vrsqrt.f32 %v2222_v61  ;;  %v816_v15 = vsel %vm2234_vm12, %v2173_v62, %v812_v1  ;;  %v769_v52 = vmul.f32 %v2206_v49, %v768_v59 }
  0xcd   : > { %v867_v14 = vmul.f32 %v826_v4, %v2049_v7  ;;  %1719 = vrsqrt.f32 %v2226_v5  ;;  %v759_v35 = vmul.f32 %v2224_v63, %v758_v13  ;;  %v866_v36 = vmul.f32 %v816_v15, %v2037_v2 }
  0xce   : > { %v806_v42 = vsel %vm2267_vm15, %v2188_v22, %v802_v16  ;;  %v770_v44 = vmul.f32 0.5, %v769_v52  ;;  %v748_v60 = vmul.f32 %v2248_v18, %v2202_v43  ;;  %v782_v0 = vmul.f32 %v2192_v27, %v781_v34 }
  0xcf   : > { %1569 = vmatpush.xpose.msk.msra.mxu0 %vm356_vm1, %v867_v14  ;;  %1606 = vmatpush.xpose.msk.msra.mxu1 %vm356_vm1, %v867_v14  ;;  %v760_v48 = vmul.f32 0.5, %v759_v35  ;;  %v865_v50 = vmul.f32 %v806_v42, %v2052_v8  ;;  %vm774_vm7 = vweird.f32 %v2206_v49  ;;  %v864_v52 = vmul.f32 %v796_v53, %v2040_v3 }
  0xd0   : > { %v624_v23 = vpop.xlane.xlu0 %623  ;;  %v621_v7 = vpop.xlane.xlu1 %620  ;;  %1607 = vmatpush.xpose.msk.msra.mxu2 %vm356_vm1, %v867_v14  ;;  %1608 = vmatpush.xpose.msk.msra.mxu3 %vm356_vm1, %v867_v14  ;;  %v771_v56 = vsub.f32 1.5, %v770_v44  ;;  %v749_v57 = vmul.f32 %v2248_v18, %v748_v60  ;;  %v1065_v14 = vld [vmem:[%s1986_s8 + $0x18] sm:$0xff]  ;;  %v786_v15 = vsel %vm2308_vm4, %v2192_v27, %v782_v0  ;;  %vm764_vm8 = vweird.f32 %v2224_v63  ;;  %vm2360_vm10 = vmor %vm773_vm5, %vm774_vm7 }
  0xd1   : > { %v2253_v24 = vpop.eup %1715  ;;  %v2258_v62 = vmax.f32 %v624_v23, 1e-24  ;;  %v2260_v25 = vmax.f32 %v621_v7, 1e-24  ;;  %v618_v31 = vpop.xlane.xlu2 %617  ;;  %v761_v16 = vsub.f32 1.5, %v760_v48  ;;  %vm753_vm9 = vweird.f32 %v2202_v43  ;;  %vm2375_vm13 = vmor %vm763_vm6, %vm764_vm8 }
  0xd2   : > { %v2280_v46 = vpop.eup %1717  ;;  %v738_v22 = vmul.f32 %v2253_v24, %v2211_v51  ;;  %v2301_v55 = vmax.f32 %v618_v31, 1e-24  ;;  %v772_v7 = vmul.f32 %v2206_v49, %v771_v56  ;;  %v750_v31 = vmul.f32 0.5, %v749_v57  ;;  %1089 = vperm.xlu2 %1693, %v1065_v14   ;;  %v1066_v57 = vld [vmem:[%s1986_s8 + $0x20] sm:$0xff] }
  0xd3   : > { %1721 = vrsqrt.f32 %v2258_v62  ;;  %1570 = vmatpush.xpose.msk.msra.mxu0 %vm356_vm1, %v866_v36  ;;  %1609 = vmatpush.xpose.msk.msra.mxu1 %vm356_vm1, %v866_v36  ;;  %v2296_v47 = vpop.eup %1719  ;;  %v728_v58 = vmul.f32 %v2280_v46, %v2222_v61  ;;  %v762_v40 = vmul.f32 %v2224_v63, %v761_v16  ;;  %vm743_vm11 = vweird.f32 %v2211_v51 }
  0xd4   : > { %1610 = vmatpush.xpose.msk.msra.mxu2 %vm356_vm1, %v866_v36  ;;  %1611 = vmatpush.xpose.msk.msra.mxu3 %vm356_vm1, %v866_v36  ;;  %1723 = vrsqrt.f32 %v2260_v25  ;;  %v739_v59 = vmul.f32 %v2253_v24, %v738_v22  ;;  %v718_v8 = vmul.f32 %v2296_v47, %v2226_v5  ;;  %vm733_vm12 = vweird.f32 %v2222_v61 }
  0xd5   : > { %1725 = vrsqrt.f32 %v2301_v55  ;;  %v729_v32 = vmul.f32 %v2280_v46, %v728_v58  ;;  %v863_v41 = vmul.f32 %v786_v15, %v2058_v12  ;;  %v776_v42 = vsel %vm2360_vm10, %v2206_v49, %v772_v7  ;;  %v1064_v58 = vld [vmem:[%s1986_s8 + $0x10] sm:$0xff] }
  0xd6   : > { %v740_v33 = vmul.f32 0.5, %v739_v59  ;;  %v719_v27 = vmul.f32 %v2296_v47, %v718_v8  ;;  %v751_v44 = vsub.f32 1.5, %v750_v31  ;;  %vm723_vm14 = vweird.f32 %v2226_v5  ;;  %1086 = vperm.xlu1 %1695, %v1064_v58  }
  0xd7   : > { %1571 = vmatpush.xpose.msk.msra.mxu0 %vm356_vm1, %v865_v50  ;;  %1612 = vmatpush.xpose.msk.msra.mxu1 %vm356_vm1, %v865_v50  ;;  %v730_v60 = vmul.f32 0.5, %v729_v32  ;;  %vm754_vm15 = vweird.f32 %v2248_v18  ;;  %vm744_vm0 = vweird.f32 %v2253_v24  ;;  %v766_v59 = vsel %vm2375_vm13, %v2224_v63, %v762_v40 }
  0xd8   : > { %v615_v6 = vpop.xlane.xlu0 %614  ;;  %v383_v4 = vpop.xlane.xlu1 %382  ;;  %1613 = vmatpush.xpose.msk.msra.mxu2 %vm356_vm1, %v865_v50  ;;  %1614 = vmatpush.xpose.msk.msra.mxu3 %vm356_vm1, %v865_v50  ;;  %v741_v12 = vsub.f32 1.5, %v740_v33  ;;  %v720_v49 = vmul.f32 0.5, %v719_v27  ;;  %vm713_vm2 = vweird.f32 %v2258_v62  ;;  %vm2416_vm3 = vmor %vm753_vm9, %vm754_vm15  ;;  %vm703_vm4 = vweird.f32 %v2260_v25 }
  0xd9   : > { %v2321_v9 = vpop.eup %1721  ;;  %v2327_v10 = vmax.f32 %v615_v6, 1e-24  ;;  %v2329_v11 = vmax.f32 %v383_v4, 1e-24  ;;  %v395_v13 = vpop.xlane.xlu2 %394  ;;  %v862_v6 = vmul.f32 %v776_v42, %v2070_v19  ;;  %v731_v14 = vsub.f32 1.5, %v730_v60  ;;  %vm2430_vm5 = vmor %vm743_vm11, %vm744_vm0 }
  0xda   : > { %v2337_v23 = vpop.eup %1723  ;;  %v708_v34 = vmul.f32 %v2321_v9, %v2258_v62  ;;  %v2380_v2 = vmax.f32 %v395_v13, 1e-24  ;;  %v752_v13 = vmul.f32 %v2248_v18, %v751_v44  ;;  %1092 = vperm.xlu2 %1693, %v1066_v57   ;;  %v2421_v19 = vmul.f32 %v2253_v24, %v741_v12 }
  0xdb   : > { %1727 = vrsqrt.f32 %v2327_v10  ;;  %1572 = vmatpush.xpose.msk.msra.mxu0 %vm356_vm1, %v864_v52  ;;  %1615 = vmatpush.xpose.msk.msra.mxu1 %vm356_vm1, %v864_v52  ;;  %v698_v3 = vmul.f32 %v2337_v23, %v2260_v25  ;;  %v2354_v35 = vpop.eup %1725  ;;  %v721_v16 = vsub.f32 1.5, %v720_v49  ;;  %vm734_vm6 = vweird.f32 %v2280_v46  ;;  %v1068_v49 = vld [vmem:[%s1986_s8 + $0x30] sm:$0xff] }
  0xdc   : > { %1616 = vmatpush.xpose.msk.msra.mxu2 %vm356_vm1, %v864_v52  ;;  %1617 = vmatpush.xpose.msk.msra.mxu3 %vm356_vm1, %v864_v52  ;;  %1729 = vrsqrt.f32 %v2329_v11  ;;  %v709_v22 = vmul.f32 %v2321_v9, %v708_v34  ;;  %v688_v53 = vmul.f32 %v2354_v35, %v2301_v55  ;;  %vm724_vm7 = vweird.f32 %v2296_v47  ;;  %vm2464_vm10 = vmor %vm733_vm12, %vm734_vm6 }
  0xdd   : > { %v699_v50 = vmul.f32 %v2337_v23, %v698_v3  ;;  %1731 = vrsqrt.f32 %v2380_v2  ;;  %v861_v33 = vmul.f32 %v766_v59, %v2073_v20  ;;  %v756_v27 = vsel %vm2416_vm3, %v2248_v18, %v752_v13  ;;  %vm2488_vm12 = vmor %vm723_vm14, %vm724_vm7 }
  0xde   : > { %v710_v52 = vmul.f32 0.5, %v709_v22  ;;  %v689_v31 = vmul.f32 %v2354_v35, %v688_v53  ;;  %v2448_v34 = vmul.f32 %v2280_v46, %v731_v14  ;;  %vm714_vm8 = vweird.f32 %v2321_v9  ;;  %v1067_v22 = vld [vmem:[%s1986_s8 + $0x28] sm:$0xff] }
  0xdf   : > { %1573 = vmatpush.xpose.msk.msra.mxu0 %vm356_vm1, %v863_v41  ;;  %1618 = vmatpush.xpose.msk.msra.mxu1 %vm356_vm1, %v863_v41  ;;  %v700_v7 = vmul.f32 0.5, %v699_v50  ;;  %vm693_vm9 = vweird.f32 %v2301_v55  ;;  %v746_v20 = vsel %vm2430_vm5, %v2253_v24, %v2421_v19  ;;  %v2469_v40 = vmul.f32 %v2296_v47, %v721_v16  ;;  %vm2524_vm0 = vmor %vm713_vm2, %vm714_vm8 }
  0xe0   : > { %v359_v26 = vpop.xlane.xlu0 %358  ;;  %v371_v0 = vpop.xlane.xlu1 %370  ;;  %1619 = vmatpush.xpose.msk.msra.mxu2 %vm356_vm1, %v863_v41  ;;  %1620 = vmatpush.xpose.msk.msra.mxu3 %vm356_vm1, %v863_v41  ;;  %v711_v41 = vsub.f32 1.5, %v710_v52  ;;  %vm704_vm11 = vweird.f32 %v2337_v23  ;;  %vm683_vm13 = vweird.f32 %v2327_v10  ;;  %v690_v44 = vmul.f32 0.5, %v689_v31 }
  0xe1   : > { %v2386_v48 = vpop.eup %1727  ;;  %v2394_v1 = vmax.f32 %v359_v26, 1e-24  ;;  %v386_v56 = vpop.xlane.xlu2 %385  ;;  %v2410_v15 = vmax.f32 %v371_v0, 1e-24  ;;  %v701_v17 = vsub.f32 1.5, %v700_v7  ;;  %1095 = vperm.xlu1 %1695, %v1067_v22   ;;  %v736_v5 = vsel %vm2464_vm10, %v2280_v46, %v2448_v34  ;;  %vm2538_vm3 = vmor %vm703_vm4, %vm704_vm11 }
  0xe2   : > { %v678_v8 = vmul.f32 %v2386_v48, %v2327_v10  ;;  %v2406_v4 = vpop.eup %1729  ;;  %v2452_v3 = vmax.f32 %v386_v56, 1e-24  ;;  %v860_v56 = vmul.f32 %v756_v27, %v2076_v21  ;;  %vm694_vm14 = vweird.f32 %v2354_v35  ;;  %1098 = vperm.xlu2 %1693, %v1068_v49  }
  0xe3   : > { %1733 = vrsqrt.f32 %v2394_v1  ;;  %1574 = vmatpush.xpose.msk.msra.mxu0 %vm356_vm1, %v862_v6  ;;  %1621 = vmatpush.xpose.msk.msra.mxu1 %vm356_vm1, %v862_v6  ;;  %v502_v51 = vmul.f32 %v2406_v4, %v2329_v11  ;;  %v2454_v36 = vpop.eup %1731  ;;  %v2507_v59 = vmul.f32 %v2321_v9, %v711_v41  ;;  %vm507_vm15 = vweird.f32 %v2329_v11  ;;  %vm2580_vm7 = vmor %vm693_vm9, %vm694_vm14 }
  0xe4   : > { %1622 = vmatpush.xpose.msk.msra.mxu2 %vm356_vm1, %v862_v6  ;;  %1623 = vmatpush.xpose.msk.msra.mxu3 %vm356_vm1, %v862_v6  ;;  %1735 = vrsqrt.f32 %v2410_v15  ;;  %v679_v32 = vmul.f32 %v2386_v48, %v678_v8  ;;  %v542_v8 = vmul.f32 %v2454_v36, %v2380_v2  ;;  %v726_v6 = vsel %vm2488_vm12, %v2296_v47, %v2469_v40 }
  0xe5   : > { %1737 = vrsqrt.f32 %v2452_v3  ;;  %v503_v50 = vmul.f32 %v2406_v4, %v502_v51  ;;  %v2529_v14 = vmul.f32 %v2337_v23, %v701_v17  ;;  %v691_v63 = vsub.f32 1.5, %v690_v44 }
  0xe6   : > { %v680_v0 = vmul.f32 0.5, %v679_v32  ;;  %v859_v16 = vmul.f32 %v746_v20, %v2088_v28  ;;  %vm684_vm2 = vweird.f32 %v2386_v48  ;;  %vm427_vm5 = vweird.f32 %v2394_v1 }
  0xe7   : > { %1575 = vmatpush.xpose.msk.msra.mxu0 %vm356_vm1, %v861_v33  ;;  %1624 = vmatpush.xpose.msk.msra.mxu1 %vm356_vm1, %v861_v33  ;;  %v504_v19 = vmul.f32 0.5, %v503_v50  ;;  %v716_v31 = vsel %vm2524_vm0, %v2321_v9, %v2507_v59  ;;  %vm508_vm4 = vweird.f32 %v2406_v4  ;;  %v543_v28 = vmul.f32 %v2454_v36, %v542_v8  ;;  %vm2594_vm8 = vmor %vm683_vm13, %vm684_vm2  ;;  %v1069_v50 = vld [vmem:[%s1986_s8 + $0x38] sm:$0xff] }
  0xe8   : > { %v362_v24 = vpop.xlane.xlu1 %361  ;;  %v398_v61 = vpop.xlane.xlu0 %397  ;;  %1625 = vmatpush.xpose.msk.msra.mxu2 %vm356_vm1, %v861_v33  ;;  %1626 = vmatpush.xpose.msk.msra.mxu3 %vm356_vm1, %v861_v33  ;;  %v681_v47 = vsub.f32 1.5, %v680_v0  ;;  %v706_v34 = vsel %vm2538_vm3, %v2337_v23, %v2529_v14  ;;  %v2567_v9 = vmul.f32 %v2354_v35, %v691_v63  ;;  %vm467_vm6 = vweird.f32 %v2410_v15  ;;  %v1071_v0 = vld [vmem:[%s1986_s8 + $0x48] sm:$0xff]  ;;  %vm2638_vm13 = vmor %vm507_vm15, %vm508_vm4 }
  0xe9   : > { %v2475_v42 = vpop.eup %1733  ;;  %v2480_v60 = vmax.f32 %v362_v24, 1e-24  ;;  %v374_v12 = vpop.xlane.xlu2 %373  ;;  %v2504_v58 = vmax.f32 %v398_v61, 1e-24  ;;  %v505_v41 = vsub.f32 1.5, %v504_v19  ;;  %v858_v61 = vmul.f32 %v736_v5, %v2091_v29  ;;  %v1063_v5 = vld [vmem:[%s1986_s8 + $0x8] sm:$0xff]  ;;  %1101 = vperm.xlu1 %1695, %v1069_v50  }
  0xea   : > { %v422_v53 = vmul.f32 %v2475_v42, %v2394_v1  ;;  %v2496_v57 = vpop.eup %1735  ;;  %v2544_v52 = vmax.f32 %v374_v12, 1e-24  ;;  %v682_v40 = vmul.f32 %v2386_v48, %v681_v47  ;;  %v544_v22 = vmul.f32 0.5, %v543_v28  ;;  %1107 = vperm.xlu2 %1693, %v1071_v0   ;;  %1083 = vperm.xlu0 %1694, %v1063_v5  }
  0xeb   : > { %1739 = vrsqrt.f32 %v2480_v60  ;;  %v462_v46 = vmul.f32 %v2496_v57, %v2410_v15  ;;  %1576 = vmatpush.xpose.msk.msra.mxu0 %vm356_vm1, %v860_v56  ;;  %1627 = vmatpush.xpose.msk.msra.mxu1 %vm356_vm1, %v860_v56  ;;  %v2546_v43 = vpop.eup %1737  ;;  %v857_v10 = vmul.f32 %v726_v6, %v2094_v30  ;;  %vm428_vm9 = vweird.f32 %v2475_v42 }
  0xec   : > { %v423_v21 = vmul.f32 %v2475_v42, %v422_v53  ;;  %1628 = vmatpush.xpose.msk.msra.mxu2 %vm356_vm1, %v860_v56  ;;  %1741 = vrsqrt.f32 %v2504_v58  ;;  %1629 = vmatpush.xpose.msk.msra.mxu3 %vm356_vm1, %v860_v56  ;;  %v512_v32 = vmul.f32 %v2546_v43, %v2452_v3  ;;  %v2613_v53 = vmul.f32 %v716_v31, %v2106_v37  ;;  %vm2648_vm12 = vmor %vm427_vm5, %vm428_vm9 }
  0xed   : > { %v463_v25 = vmul.f32 %v2496_v57, %v462_v46  ;;  %1743 = vrsqrt.f32 %v2544_v52  ;;  %v686_v30 = vsel %vm2594_vm8, %v2386_v48, %v682_v40  ;;  %v696_v59 = vsel %vm2580_vm7, %v2354_v35, %v2567_v9  ;;  %v1074_v9 = vld [vmem:[%s1986_s8 + $0x60] sm:$0xff] }
  0xee   : > { %v424_v7 = vmul.f32 0.5, %v423_v21  ;;  %v513_v29 = vmul.f32 %v2546_v43, %v512_v32  ;;  %vm547_vm10 = vweird.f32 %v2380_v2  ;;  %vm548_vm11 = vweird.f32 %v2454_v36  ;;  %v1793_v35 = vld [vmem:[%s1976_s27 + $0x20] sm:$0xff] }
  0xef   : > { %1577 = vmatpush.xpose.msk.msra.mxu0 %vm356_vm1, %v859_v16  ;;  %1630 = vmatpush.xpose.msk.msra.mxu1 %vm356_vm1, %v859_v16  ;;  %v464_v12 = vmul.f32 0.5, %v463_v25  ;;  %v2632_v8 = vmul.f32 %v2406_v4, %v505_v41  ;;  %v545_v11 = vsub.f32 1.5, %v544_v22  ;;  %vm468_vm14 = vweird.f32 %v2496_v57  ;;  %v1072_v41 = vld [vmem:[%s1986_s8 + $0x50] sm:$0xff]  ;;  %vm2744_vm8 = vmor %vm547_vm10, %vm548_vm11 }
  0xf0   : > { %v401_v51 = vpop.xlane.xlu1 %400  ;;  %v389_v33 = vpop.xlane.xlu0 %388  ;;  %1631 = vmatpush.xpose.msk.msra.mxu2 %vm356_vm1, %v859_v16  ;;  %1632 = vmatpush.xpose.msk.msra.mxu3 %vm356_vm1, %v859_v16  ;;  %v425_v44 = vsub.f32 1.5, %v424_v7  ;;  %v514_v13 = vmul.f32 0.5, %v513_v29  ;;  %v2662_v1 = vmul.f32 %v706_v34, %v2109_v38  ;;  %vm437_vm15 = vweird.f32 %v2480_v60  ;;  %vm2696_vm0 = vmor %vm467_vm6, %vm468_vm14 }
  0xf1   : > { %v2560_v27 = vpop.eup %1739  ;;  %v2573_v20 = vmax.f32 %v401_v51, 1e-24  ;;  %v365_v18 = vpop.xlane.xlu2 %364  ;;  %v2599_v49 = vmax.f32 %v389_v33, 1e-24  ;;  %v465_v46 = vsub.f32 1.5, %v464_v12  ;;  %v2672_v28 = vmul.f32 %v696_v59, %v2112_v39  ;;  %1110 = vperm.xlu1 %1695, %v1072_v41  }
  0xf2   : > { %v432_v24 = vmul.f32 %v2560_v27, %v2480_v60  ;;  %v2588_v17 = vpop.eup %1741  ;;  %v2615_v56 = vmax.f32 %v365_v18, 1e-24  ;;  %v426_v48 = vmul.f32 %v2475_v42, %v425_v44  ;;  %v2675_v32 = vmul.f32 %v686_v30, %v2123_v45  ;;  %1116 = vperm.xlu2 %1693, %v1074_v9   ;;  %v1798_v60 = vld [vmem:[%s1976_s27 + $0x68] sm:$0xff] }
  0xf3   : > { %1745 = vrsqrt.f32 %v2573_v20  ;;  %v552_v26 = vmul.f32 %v2588_v17, %v2504_v58  ;;  %1578 = vmatpush.xpose.msk.msra.mxu0 %vm356_vm1, %v858_v61  ;;  %1633 = vmatpush.xpose.msk.msra.mxu1 %vm356_vm1, %v858_v61  ;;  %v2629_v37 = vpop.eup %1743  ;;  %v466_v33 = vmul.f32 %v2496_v57, %v465_v46  ;;  %v510_v39 = vsel %vm2638_vm13, %v2406_v4, %v2632_v8 }
  0xf4   : > { %1634 = vmatpush.xpose.msk.msra.mxu2 %vm356_vm1, %v858_v61  ;;  %1747 = vrsqrt.f32 %v2599_v49  ;;  %v433_v21 = vmul.f32 %v2560_v27, %v432_v24  ;;  %1635 = vmatpush.xpose.msk.msra.mxu3 %vm356_vm1, %v858_v61  ;;  %v472_v63 = vmul.f32 %v2629_v37, %v2544_v52  ;;  %v430_v34 = vsel %vm2648_vm12, %v2475_v42, %v426_v48  ;;  %v1070_v24 = vld [vmem:[%s1986_s8 + $0x40] sm:$0xff] }
  0xf5   : > { %1749 = vrsqrt.f32 %v2615_v56  ;;  %v553_v14 = vmul.f32 %v2588_v17, %v552_v26  ;;  %v2690_v45 = vmul.f32 %v2454_v36, %v545_v11  ;;  %v515_v40 = vsub.f32 1.5, %v514_v13  ;;  %1104 = vperm.xlu0 %1694, %v1070_v24  }
  0xf6   : > { %v434_v25 = vmul.f32 0.5, %v433_v21  ;;  %v473_v31 = vmul.f32 %v2629_v37, %v472_v63  ;;  %vm557_vm3 = vweird.f32 %v2504_v58  ;;  %vm517_vm2 = vweird.f32 %v2452_v3 }
  0xf7   : > { %1579 = vmatpush.xpose.msk.msra.mxu0 %vm356_vm1, %v857_v10  ;;  %1636 = vmatpush.xpose.msk.msra.mxu1 %vm356_vm1, %v857_v10  ;;  %v554_v23 = vmul.f32 0.5, %v553_v14  ;;  %vm518_vm5 = vweird.f32 %v2546_v43  ;;  %vm477_vm4 = vweird.f32 %v2544_v52  ;;  %v581_v29 = vmul.f32 14.285714, %v430_v34 }
  0xf8   : > { %v392_v62 = vpop.xlane.xlu1 %391  ;;  %v377_v47 = vpop.xlane.xlu0 %376  ;;  %1637 = vmatpush.xpose.msk.msra.mxu2 %vm356_vm1, %v857_v10  ;;  %1638 = vmatpush.xpose.msk.msra.mxu3 %vm356_vm1, %v857_v10  ;;  %v474_v15 = vmul.f32 0.5, %v473_v31  ;;  %v435_v12 = vsub.f32 1.5, %v434_v25  ;;  %vm438_vm6 = vweird.f32 %v2560_v27  ;;  %vm558_vm7 = vweird.f32 %v2588_v17 }
  0xf9   : > { %v2656_v19 = vpop.eup %1745  ;;  %v2664_v16 = vmax.f32 %v392_v62, 1e-24  ;;  %v2666_v7 = vmax.f32 %v377_v47, 1e-24  ;;  %v404_v38 = vpop.xlane.xlu2 %403  ;;  %v470_v26 = vsel %vm2696_vm0, %v2496_v57, %v466_v33  ;;  %v2732_v10 = vmul.f32 %v2546_v43, %v515_v40  ;;  %v1077_v47 = vld [vmem:[%s1986_s8 + $0x78] sm:$0xff]  ;;  %vm2796_vm14 = vmor %vm437_vm15, %vm438_vm6 }
  0xfa   : > { %v2677_v51 = vpop.eup %1747  ;;  %v562_v42 = vmul.f32 %v2656_v19, %v2573_v20  ;;  %v2718_v44 = vmax.f32 %v404_v38, 1e-24  ;;  %v555_v0 = vsub.f32 1.5, %v554_v23  ;;  %v475_v21 = vsub.f32 1.5, %v474_v15  ;;  %v1075_v38 = vld [vmem:[%s1986_s8 + $0x68] sm:$0xff]  ;;  %v1073_v33 = vld [vmem:[%s1986_s8 + $0x58] sm:$0xff]  ;;  %1125 = vperm.xlu2 %1693, %v1077_v47   ;;  %vm2829_vm13 = vmor %vm557_vm3, %vm558_vm7 }
  0xfb   : > { %1751 = vrsqrt.f32 %v2664_v16  ;;  %1580 = vmatpush.xpose.msk.msra.mxu0 %vm356_vm1, %v2613_v53  ;;  %v2707_v61 = vpop.eup %1749  ;;  %v522_v55 = vmul.f32 %v2677_v51, %v2599_v49  ;;  %1639 = vmatpush.xpose.msk.msra.mxu1 %vm356_vm1, %v2613_v53  ;;  %vm527_vm9 = vweird.f32 %v2599_v49  ;;  %v2759_v2 = vmul.f32 %v2560_v27, %v435_v12  ;;  %v1794_v12 = vld [vmem:[%s1976_s27 + $0x40] sm:$0xff] }
  0xfc   : > { %1640 = vmatpush.xpose.msk.msra.mxu2 %vm356_vm1, %v2613_v53  ;;  %1753 = vrsqrt.f32 %v2666_v7  ;;  %1641 = vmatpush.xpose.msk.msra.mxu3 %vm356_vm1, %v2613_v53  ;;  %v442_v22 = vmul.f32 %v2707_v61, %v2615_v56  ;;  %v563_v50 = vmul.f32 %v2656_v19, %v562_v42  ;;  %vm478_vm10 = vweird.f32 %v2629_v37 }
  0xfd   : > { %1755 = vrsqrt.f32 %v2718_v44  ;;  %v523_v48 = vmul.f32 %v2677_v51, %v522_v55  ;;  %vm447_vm11 = vweird.f32 %v2615_v56  ;;  %v837_v13 = vmul.f32 %v581_v29, %v2133_v54  ;;  %vm2815_vm15 = vmor %vm477_vm4, %vm478_vm10  ;;  %1119 = vperm.xlu1 %1695, %v1075_v38   ;;  %1113 = vperm.xlu0 %1694, %v1073_v33  }
  0xfe   : > { %v443_v53 = vmul.f32 %v2707_v61, %v442_v22  ;;  %vm487_vm12 = vweird.f32 %v2666_v7  ;;  %v585_v62 = vmul.f32 14.285714, %v470_v26  ;;  %v2776_v25 = vmul.f32 0.5, %v563_v50 }
  0xff   : > { %1581 = vmatpush.xpose.msk.msra.mxu0 %vm356_vm1, %v2662_v1  ;;  %1642 = vmatpush.xpose.msk.msra.mxu1 %vm356_vm1, %v2662_v1  ;;  %vm568_vm0 = vweird.f32 %v2656_v19  ;;  %v550_v31 = vsel %vm2744_vm8, %v2454_v36, %v2690_v45  ;;  %v476_v18 = vmul.f32 %v2629_v37, %v475_v21  ;;  %v524_v40 = vmul.f32 0.5, %v523_v48  ;;  %vm2840_vm8 = vmor %vm517_vm2, %vm518_vm5 }
 0x100   : > { %v380_v5 = vpop.xlane.xlu1 %379  ;;  %v368_v30 = vpop.xlane.xlu0 %367  ;;  %1643 = vmatpush.xpose.msk.msra.mxu2 %vm356_vm1, %v2662_v1  ;;  %1644 = vmatpush.xpose.msk.msra.mxu3 %vm356_vm1, %v2662_v1  ;;  %v444_v11 = vmul.f32 0.5, %v443_v53  ;;  %v2774_v1 = vmul.f32 %v2588_v17, %v555_v0  ;;  %v589_v36 = vmul.f32 14.285714, %v510_v39  ;;  %vm528_vm6 = vweird.f32 %v2677_v51 }
 0x101   : > { %v2738_v59 = vpop.eup %1751  ;;  %v2754_v46 = vmax.f32 %v380_v5, 1e-24  ;;  %v2756_v6 = vmax.f32 %v368_v30, 1e-24  ;;  %vm448_vm4 = vweird.f32 %v2707_v61  ;;  %v841_v39 = vmul.f32 %v1793_v35, %v585_v62  ;;  %vm2884_vm2 = vmor %vm527_vm9, %vm528_vm6 }
 0x102   : > { %v2766_v14 = vpop.eup %1753  ;;  %v532_v63 = vmul.f32 %v2738_v59, %v2664_v16  ;;  %v445_v45 = vsub.f32 1.5, %v444_v11  ;;  %v565_v42 = vsub.f32 1.5, %v2776_v25  ;;  %v440_v15 = vsel %vm2796_vm14, %v2560_v27, %v2759_v2  ;;  %vm2899_vm5 = vmor %vm447_vm11, %vm448_vm4 }
 0x103   : > { %1757 = vrsqrt.f32 %v2754_v46  ;;  %v482_v54 = vmul.f32 %v2766_v14, %v2666_v7  ;;  %1582 = vmatpush.xpose.msk.msra.mxu0 %vm356_vm1, %v2672_v28  ;;  %v2790_v34 = vpop.eup %1755  ;;  %1645 = vmatpush.xpose.msk.msra.mxu1 %vm356_vm1, %v2672_v28  ;;  %v525_v3 = vsub.f32 1.5, %v524_v40  ;;  %vm488_vm3 = vweird.f32 %v2766_v14  ;;  %v1796_v7 = vld [vmem:[%s1976_s27 + $0x8] sm:$0xff] }
 0x104   : > { %1646 = vmatpush.xpose.msk.msra.mxu2 %vm356_vm1, %v2672_v28  ;;  %1759 = vrsqrt.f32 %v2756_v6  ;;  %1647 = vmatpush.xpose.msk.msra.mxu3 %vm356_vm1, %v2672_v28  ;;  %v572_v4 = vmul.f32 %v2790_v34, %v2718_v44  ;;  %v533_v8 = vmul.f32 %v2738_v59, %v532_v63  ;;  %v593_v28 = vmul.f32 14.285714, %v550_v31  ;;  %vm2911_vm9 = vmor %vm487_vm12, %vm488_vm3 }
 0x105   : > { %v483_v23 = vmul.f32 %v2766_v14, %v482_v54  ;;  %v845_v22 = vmul.f32 %v1794_v12, %v589_v36  ;;  %v480_v29 = vsel %vm2815_vm15, %v2629_v37, %v476_v18  ;;  %v446_v27 = vmul.f32 %v2707_v61, %v445_v45  ;;  %v1795_v37 = vld [vmem:[%s1976_s27 + $0x60] sm:$0xff]  ;;  %v1797_v18 = vld [vmem:[%s1976_s27 + $0x28] sm:$0xff] }
 0x106   : > { %v573_v24 = vmul.f32 %v2790_v34, %v572_v4  ;;  %v560_v50 = vsel %vm2829_vm13, %v2588_v17, %v2774_v1  ;;  %v534_v5 = vmul.f32 0.5, %v533_v8  ;;  %v849_v30 = vmul.f32 %v1795_v37, %v593_v28  ;;  %v1799_v8 = vld [vmem:[%s1976_s27 + $0x48] sm:$0xff]  ;;  %v3024_v54 = vld [vmem:[%s264_s16] ss:$0 sm:$0xff] }
 0x107   : > { %v484_v41 = vmul.f32 0.5, %v483_v23  ;;  %1583 = vmatpush.xpose.msk.msra.mxu0 %vm356_vm1, %v2675_v32  ;;  %1648 = vmatpush.xpose.msk.msra.mxu1 %vm356_vm1, %v2675_v32  ;;  %v582_v57 = vmul.f32 14.285714, %v440_v15  ;;  %v586_v11 = vmul.f32 14.285714, %v480_v29  ;;  %vm537_vm7 = vweird.f32 %v2664_v16 }
 0x108   : > { %1649 = vmatpush.xpose.msk.msra.mxu2 %vm356_vm1, %v2675_v32  ;;  %1650 = vmatpush.xpose.msk.msra.mxu3 %vm356_vm1, %v2675_v32  ;;  %v520_v32 = vsel %vm2840_vm8, %v2546_v43, %v2732_v10  ;;  %v574_v17 = vmul.f32 0.5, %v573_v24  ;;  %v1076_v43 = vld [vmem:[%s1986_s8 + $0x70] sm:$0xff]  ;;  %v526_v10 = vmul.f32 %v2677_v51, %v525_v3  ;;  %v594_v63 = vmul.f32 14.285714, %v560_v50 }
 0x109   : > { %v2852_v55 = vpop.eup %1757  ;;  %v485_v26 = vsub.f32 1.5, %v484_v41  ;;  %v566_v62 = vmul.f32 %v2656_v19, %v565_v42  ;;  %v590_v25 = vmul.f32 14.285714, %v520_v32  ;;  %vm3193_vm10 = vweird.f32 %v2573_v20  ;;  %1122 = vperm.xlu0 %1694, %v1076_v43   ;;  %v1800_v3 = vld [vmem:[%s1976_s27 + $0x10] sm:$0xff]  ;;  %v1804_v32 = vld [vmem:[%s1976_s27 + $0x18] sm:$0xff] }
 0x10a   : > { %v492_v0 = vmul.f32 %v2852_v55, %v2754_v46  ;;  %v2872_v53 = vpop.eup %1759  ;;  %1584 = vmatmul.msk.f32.vlgmr.msra.gmra.mxu0 %vm356_vm1, %v837_v13  ;;  %1588 = vmatmul.msk.f32.vlgmr.msra.gmra.mxu1 %vm356_vm1, %v841_v39  ;;  %vm2920_vm11 = vmor %vm3193_vm10, %vm568_vm0  ;;  %v535_v31 = vsub.f32 1.5, %v534_v5  ;;  %vm538_vm14 = vweird.f32 %v2738_v59  ;;  %vm457_vm12 = vweird.f32 %v2756_v6 }
 0x10b   : > { %v452_v2 = vmul.f32 %v2872_v53, %v2756_v6  ;;  %1592 = vmatmul.msk.f32.vlgmr.msra.gmra.mxu2 %vm356_vm1, %v845_v22  ;;  %v486_v13 = vmul.f32 %v2766_v14, %v485_v26  ;;  %1596 = vmatmul.msk.f32.vlgmr.msra.gmra.mxu3 %vm356_vm1, %v849_v30  ;;  %v838_v38 = vmul.f32 %v1796_v7, %v582_v57  ;;  %v575_v33 = vsub.f32 1.5, %v574_v17  ;;  %vm2951_vm4 = vmor %vm537_vm7, %vm538_vm14  ;;  %v1801_v22 = vld [vmem:[%s1976_s27 + $0x30] sm:$0xff] }
 0x10c   : > { %v493_v48 = vmul.f32 %v2852_v55, %v492_v0  ;;  %v842_v40 = vmul.f32 %v1797_v18, %v586_v11  ;;  %v450_v20 = vsel %vm2899_vm5, %v2707_v61, %v446_v27  ;;  %v850_v45 = vmul.f32 %v1798_v60, %v594_v63  ;;  %v1802_v27 = vld [vmem:[%s1976_s27 + $0x50] sm:$0xff]  ;;  %v1807_v11 = vld [vmem:[%s1976_s27 + $0x78] sm:$0xff] }
 0x10d   : > { %v453_v1 = vmul.f32 %v2872_v53, %v452_v2  ;;  %v490_v23 = vsel %vm2911_vm9, %v2766_v14, %v486_v13  ;;  %v530_v4 = vsel %vm2884_vm2, %v2677_v51, %v526_v10  ;;  %vm458_vm0 = vweird.f32 %v2872_v53  ;;  %v1803_v0 = vld [vmem:[%s1976_s27 + $0x70] sm:$0xff] }
 0x10e   : > { %v494_v47 = vmul.f32 0.5, %v493_v48  ;;  %v846_v35 = vmul.f32 %v1799_v8, %v590_v25  ;;  %v570_v61 = vsel %vm2920_vm11, %v2656_v19, %v566_v62  ;;  %vm577_vm15 = vweird.f32 %v2718_v44  ;;  %vm2965_vm3 = vmor %vm457_vm12, %vm458_vm0  ;;  %v1806_v48 = vld [vmem:[%s1976_s27 + $0x58] sm:$0xff] }
 0x10f   : > { %v454_v9 = vmul.f32 0.5, %v453_v1  ;;  %vm497_vm6 = vweird.f32 %v2754_v46  ;;  %vm498_vm13 = vweird.f32 %v2852_v55  ;;  %v583_v14 = vmul.f32 14.285714, %v450_v20 }
 0x110   : > { %v495_v36 = vsub.f32 1.5, %v494_v47  ;;  %vm578_vm8 = vweird.f32 %v2790_v34  ;;  %v587_v39 = vmul.f32 14.285714, %v490_v23  ;;  %v591_v28 = vmul.f32 14.285714, %v530_v4  ;;  %vm2975_vm2 = vmor %vm497_vm6, %vm498_vm13 }
 0x111   : > { %v455_v52 = vsub.f32 1.5, %v454_v9  ;;  %v536_v16 = vmul.f32 %v2738_v59, %v535_v31  ;;  %v595_v41 = vmul.f32 14.285714, %v570_v61  ;;  %v576_v24 = vmul.f32 %v2790_v34, %v575_v33  ;;  %vm2981_vm5 = vmor %vm577_vm15, %vm578_vm8 }
 0x112   : > { %1585 = vmatmul.msk.f32.gmra.mxu0 %vm356_vm1, %v838_v38  ;;  %1589 = vmatmul.msk.f32.gmra.mxu1 %vm356_vm1, %v842_v40  ;;  %v496_v58 = vmul.f32 %v2852_v55, %v495_v36  ;;  %v839_v12 = vmul.f32 %v1800_v3, %v583_v14  ;;  %v843_v29 = vmul.f32 %v1801_v22, %v587_v39 }
 0x113   : > { %v456_v19 = vmul.f32 %v2872_v53, %v455_v52  ;;  %1593 = vmatmul.msk.f32.gmra.mxu2 %vm356_vm1, %v846_v35  ;;  %1597 = vmatmul.msk.f32.gmra.mxu3 %vm356_vm1, %v850_v45  ;;  %v847_v26 = vmul.f32 %v1802_v27, %v591_v28  ;;  %v851_v50 = vmul.f32 %v1803_v0, %v595_v41 }
 0x114   : > { %v500_v44 = vsel %vm2975_vm2, %v2852_v55, %v496_v58  ;;  %v540_v5 = vsel %vm2951_vm4, %v2738_v59, %v536_v16  ;;  %v580_v37 = vsel %vm2981_vm5, %v2790_v34, %v576_v24  ;;  %v1805_v59 = vld [vmem:[%s1976_s27 + $0x38] sm:$0xff] }
 0x115   : > { %v460_v46 = vsel %vm2965_vm3, %v2872_v53, %v456_v19  ;;  %v588_v30 = vmul.f32 14.285714, %v500_v44  ;;  %v592_v57 = vmul.f32 14.285714, %v540_v5  ;;  %v596_v55 = vmul.f32 14.285714, %v580_v37 }
 0x116   : > { %v584_v53 = vmul.f32 14.285714, %v460_v46 }
 0x117   : > { %v844_v17 = vmul.f32 %v1805_v59, %v588_v30  ;;  %v848_v2 = vmul.f32 %v1806_v48, %v592_v57  ;;  %v852_v34 = vmul.f32 %v1807_v11, %v596_v55 }
 0x118   : > { %v840_v21 = vmul.f32 %v1804_v32, %v584_v53 }
 0x11a   : > { %1586 = vmatmul.msk.f32.gmra.mxu0 %vm356_vm1, %v839_v12  ;;  %1590 = vmatmul.msk.f32.gmra.mxu1 %vm356_vm1, %v843_v29 }
 0x11b   : > { %1594 = vmatmul.msk.f32.gmra.mxu2 %vm356_vm1, %v847_v26  ;;  %1598 = vmatmul.msk.f32.gmra.mxu3 %vm356_vm1, %v851_v50 }
 0x122   : > { %1587 = vmatmul.msk.f32.gmra.mxu0 %vm356_vm1, %v840_v21  ;;  %1591 = vmatmul.msk.f32.gmra.mxu1 %vm356_vm1, %v844_v17 }
 0x123   : > { %1595 = vmatmul.msk.f32.gmra.mxu2 %vm356_vm1, %v848_v2  ;;  %1599 = vmatmul.msk.f32.gmra.mxu3 %vm356_vm1, %v852_v34 }
 0x124   : > { %v1081_v43 = vpop.permute.xlu2 %1080 }
 0x125   : > { %vm1128_vm1 = vcmp.eq.s32.totalorder %v1081_v43, %v3024_v54 }
 0x12c   : > { %v3013_v10 = vpop.permute.xlu2 %1089 }
 0x12d   : > { %vm1131_vm8 = vcmp.eq.s32.totalorder %v3013_v10, %v3024_v54 }
 0x134   : > { %v1093_v49 = vpop.permute.xlu2 %1092 }
 0x135   : > { %vm1132_vm9 = vcmp.eq.s32.totalorder %v1093_v49, %v3024_v54 }
 0x13c   : > { %v3017_v25 = vpop.permute.xlu2 %1098 }
 0x13d   : > { %vm1134_vm6 = vcmp.eq.s32.totalorder %v3017_v25, %v3024_v54 }
 0x144   : > { %v1108_v45 = vpop.permute.xlu2 %1107 }
 0x145   : > { %vm1137_vm12 = vcmp.eq.s32.totalorder %v1108_v45, %v3024_v54 }
 0x148   : > { %v3015_v13 = vpop.permute.xlu1 %1086 }
 0x149   : > { %vm1130_vm15 = vcmp.eq.s32.totalorder %v3015_v13, %v3024_v54 }
 0x14c   : > { %v1117_v39 = vpop.permute.xlu2 %1116 }
 0x14d   : > { %vm1140_vm10 = vcmp.eq.s32.totalorder %v1117_v39, %v3024_v54 }
 0x153   : > { %v3026_v31 = vpop.permute.xlu1 %1095 }
 0x154   : > { %vm1133_vm0 = vcmp.eq.s32.totalorder %v3026_v31, %v3024_v54 }
 0x15b   : > { %v3031_v52 = vpop.permute.xlu1 %1101 }
 0x15c   : > { %v1084_v1 = vpop.permute.xlu0 %1083  ;;  %vm1135_vm2 = vcmp.eq.s32.totalorder %v3031_v52, %v3024_v54 }
 0x15d   : > { %vm1129_vm11 = vcmp.eq.s32.totalorder %v1084_v1, %v3024_v54 }
 0x163   : > { %v3034_v41 = vpop.permute.xlu1 %1110 }
 0x164   : > { %vm1138_vm4 = vcmp.eq.s32.totalorder %v3034_v41, %v3024_v54  ;;  %v1242_v41 = vld [vmem:[#allocation3 + $0x8] sm:$0xff] }
 0x167   : > { %v1105_v20 = vpop.permute.xlu0 %1104 }
 0x168   : > { %vm1136_vm7 = vcmp.eq.s32.totalorder %v1105_v20, %v3024_v54  ;;  %v1241_v20 = vld [vmem:[#allocation3] sm:$0xff] }
 0x16f   : > { %v1120_v29 = vpop.permute.xlu1 %1119  ;;  %v1114_v30 = vpop.permute.xlu0 %1113 }
 0x170   : > { %vm1141_vm14 = vcmp.eq.s32.totalorder %v1120_v29, %v3024_v54  ;;  %vm1139_vm3 = vcmp.eq.s32.totalorder %v1114_v30, %v3024_v54  ;;  %v1157_v30 = vld [vmem:[#allocation2 + $0x68] sm:$0xff] }
 0x17b   : > { %v1123_v2 = vpop.permute.xlu0 %1122 }
 0x17c   : > { %vm1142_vm13 = vcmp.eq.s32.totalorder %v1123_v2, %v3024_v54 }
 0x187   : > { %v982_v63 = vpop.f32.mrf.mxu0  ;;  %v994_v62 = vpop.f32.mrf.mxu1 }
 0x188   : > { %v1030_v56 = vmul.f32 1.442695, %v982_v63  ;;  %v1038_v47 = vmul.f32 1.442695, %v994_v62 }
 0x18a   : > { %1761 = vpow2.f32 %v1030_v56 }
 0x18b   : > { %1763 = vpow2.f32 %v1038_v47 }
 0x18e   : > { %v1006_v7 = vpop.f32.mrf.mxu2  ;;  %v1018_v18 = vpop.f32.mrf.mxu3 }
 0x18f   : > { %v1046_v38 = vmul.f32 1.442695, %v1006_v7  ;;  %v1054_v36 = vmul.f32 1.442695, %v1018_v18  ;;  %v985_v60 = vpop.f32.mrf.mxu0  ;;  %v997_v14 = vpop.f32.mrf.mxu1 }
 0x190   : > { %v1762_v33 = vpop.eup %1761  ;;  %v1032_v4 = vmul.f32 1.442695, %v985_v60  ;;  %v1040_v28 = vmul.f32 1.442695, %v997_v14  ;;  %v1144_v60 = vld [vmem:[#allocation2] sm:$0xff] }
 0x191   : > { %v1764_v9 = vpop.eup %1763  ;;  %1765 = vpow2.f32 %v1046_v38  ;;  %1257 = vadd.xlane.f32.xlu2 %v1762_v33  ;;  %v1160_v40 = vsel %vm1128_vm1, %v1762_v33, 0.0  ;;  %vm1224_vm1 = vcmask 7168   ;;  %v1249_v14 = vld [vmem:[#allocation3 + $0x40] sm:$0xff] }
 0x192   : > { %1265 = vadd.xlane.f32.xlu0 %v1764_v9  ;;  %1176 = vadd.xlane.f32.xlu1 %v1160_v40  ;;  %1767 = vpow2.f32 %v1054_v36  ;;  %v1164_v8 = vsel %vm1132_vm9, %v1764_v9, 0.0  ;;  %v1126_v9 = vpop.permute.xlu2 %1125  ;;  %v1245_v36 = vld [vmem:[#allocation3 + $0x20] sm:$0xff] }
 0x193   : > { %1769 = vpow2.f32 %v1032_v4  ;;  %vm1143_vm5 = vcmp.eq.s32.totalorder %v1126_v9, %v3024_v54  ;;  %v1148_v54 = vld [vmem:[#allocation2 + $0x20] sm:$0xff] }
 0x196   : > { %v1009_v61 = vpop.f32.mrf.mxu2  ;;  %v1021_v16 = vpop.f32.mrf.mxu3 }
 0x197   : > { %v1766_v23 = vpop.eup %1765  ;;  %v1048_v19 = vmul.f32 1.442695, %v1009_v61  ;;  %v1056_v24 = vmul.f32 1.442695, %v1021_v16  ;;  %v988_v12 = vpop.f32.mrf.mxu0  ;;  %v1152_v61 = vld [vmem:[#allocation2 + $0x40] sm:$0xff] }
 0x198   : > { %v1168_v35 = vsel %vm1136_vm7, %v1766_v23, 0.0  ;;  %v1768_v51 = vpop.eup %1767  ;;  %v1000_v22 = vpop.f32.mrf.mxu1  ;;  %v1034_v46 = vmul.f32 1.442695, %v988_v12 }
 0x199   : > { %1184 = vadd.xlane.f32.xlu2 %v1164_v8  ;;  %v1770_v58 = vpop.eup %1769  ;;  %v1172_v42 = vsel %vm1140_vm10, %v1768_v51, 0.0  ;;  %1771 = vpow2.f32 %v1048_v19  ;;  %v1042_v0 = vmul.f32 1.442695, %v1000_v22 }
 0x19a   : > { %1192 = vadd.xlane.f32.xlu0 %v1168_v35  ;;  %1273 = vadd.xlane.f32.xlu1 %v1766_v23  ;;  %1773 = vpow2.f32 %v1040_v28  ;;  %v1161_v3 = vsel %vm1129_vm11, %v1770_v58, 0.0 }
 0x19b   : > { %1775 = vpow2.f32 %v1056_v24  ;;  %v1156_v24 = vld [vmem:[#allocation2 + $0x60] sm:$0xff] }
 0x19c   : > { %1777 = vpow2.f32 %v1034_v46  ;;  %v1246_v46 = vld [vmem:[#allocation3 + $0x28] sm:$0xff] }
 0x19d   : > { %1779 = vpow2.f32 %v1042_v0 }
 0x19e   : > { %v1012_v27 = vpop.f32.mrf.mxu2  ;;  %v1024_v5 = vpop.f32.mrf.mxu3 }
 0x19f   : > { %v1772_v15 = vpop.eup %1771  ;;  %v1050_v50 = vmul.f32 1.442695, %v1012_v27  ;;  %v1058_v57 = vmul.f32 1.442695, %v1024_v5  ;;  %v991_v59 = vpop.f32.mrf.mxu0  ;;  %v1250_v27 = vld [vmem:[#allocation3 + $0x48] sm:$0xff] }
 0x1a0   : > { %v1774_v6 = vpop.eup %1773  ;;  %v1169_v53 = vsel %vm1137_vm12, %v1772_v15, 0.0  ;;  %v1036_v17 = vmul.f32 1.442695, %v991_v59  ;;  %v1003_v48 = vpop.f32.mrf.mxu1 }
 0x1a1   : > { %1281 = vadd.xlane.f32.xlu2 %v1768_v51  ;;  %v3037_v26 = vpop.eup %1775  ;;  %v1165_v37 = vsel %vm1133_vm0, %v1774_v6, 0.0  ;;  %1781 = vpow2.f32 %v1050_v50  ;;  %v1044_v34 = vmul.f32 1.442695, %v1003_v48 }
 0x1a2   : > { %1259 = vadd.xlane.f32.xlu0 %v1770_v58  ;;  %1200 = vadd.xlane.f32.xlu1 %v1172_v42  ;;  %v1173_v44 = vsel %vm1141_vm14, %v3037_v26, 0.0  ;;  %v1778_v55 = vpop.eup %1777  ;;  %1783 = vpow2.f32 %v1058_v57  ;;  %v1253_v42 = vld [vmem:[#allocation3 + $0x60] sm:$0xff]  ;;  %v1149_v57 = vld [vmem:[#allocation2 + $0x28] sm:$0xff] }
 0x1a3   : > { %v1780_v32 = vpop.eup %1779  ;;  %1785 = vpow2.f32 %v1036_v17  ;;  %v1162_v43 = vsel %vm1130_vm15, %v1778_v55, 0.0 }
 0x1a4   : > { %v1166_v62 = vsel %vm1134_vm6, %v1780_v32, 0.0  ;;  %1787 = vpow2.f32 %v1044_v34  ;;  %v1251_v34 = vld [vmem:[#allocation3 + $0x50] sm:$0xff] }
 0x1a6   : > { %v1015_v49 = vpop.f32.mrf.mxu2  ;;  %v1027_v25 = vpop.f32.mrf.mxu3 }
 0x1a7   : > { %v1782_v21 = vpop.eup %1781  ;;  %v1052_v56 = vmul.f32 1.442695, %v1015_v49  ;;  %v1060_v7 = vmul.f32 1.442695, %v1027_v25  ;;  %v1158_v25 = vld [vmem:[#allocation2 + $0x70] sm:$0xff] }
 0x1a8   : > { %v1784_v11 = vpop.eup %1783  ;;  %v1170_v13 = vsel %vm1138_vm4, %v1782_v21, 0.0 }
 0x1a9   : > { %1275 = vadd.xlane.f32.xlu2 %v1772_v15  ;;  %v1174_v63 = vsel %vm1142_vm13, %v1784_v11, 0.0  ;;  %v1786_v47 = vpop.eup %1785  ;;  %1789 = vpow2.f32 %v1052_v56 }
 0x1aa   : > { %1178 = vadd.xlane.f32.xlu0 %v1161_v3  ;;  %1267 = vadd.xlane.f32.xlu1 %v1774_v6  ;;  %v1788_v1 = vpop.eup %1787  ;;  %v1163_v31 = vsel %vm1131_vm8, %v1786_v47, 0.0  ;;  %1791 = vpow2.f32 %v1060_v7 }
 0x1ab   : > { %v1167_v10 = vsel %vm1135_vm2, %v1788_v1, 0.0 }
 0x1af   : > { %v1790_v38 = vpop.eup %1789 }
 0x1b0   : > { %v1171_v33 = vsel %vm1139_vm3, %v1790_v38, 0.0  ;;  %v1792_v18 = vpop.eup %1791 }
 0x1b1   : > { %1202 = vadd.xlane.f32.xlu2 %v1173_v44  ;;  %v1175_v40 = vsel %vm1143_vm5, %v1792_v18, 0.0 }
 0x1b2   : > { %1186 = vadd.xlane.f32.xlu0 %v1165_v37  ;;  %1194 = vadd.xlane.f32.xlu1 %v1169_v53 }
 0x1b9   : > { %1269 = vadd.xlane.f32.xlu2 %v1780_v32 }
 0x1ba   : > { %1277 = vadd.xlane.f32.xlu0 %v1782_v21  ;;  %1261 = vadd.xlane.f32.xlu1 %v1778_v55  ;;  %v1153_v55 = vld [vmem:[#allocation2 + $0x48] sm:$0xff] }
 0x1c1   : > { %1180 = vadd.xlane.f32.xlu2 %v1162_v43  ;;  %v1243_v43 = vld [vmem:[#allocation3 + $0x10] sm:$0xff] }
 0x1c2   : > { %1204 = vadd.xlane.f32.xlu0 %v1174_v63  ;;  %1188 = vadd.xlane.f32.xlu1 %v1166_v62 }
 0x1c9   : > { %1196 = vadd.xlane.f32.xlu2 %v1170_v13 }
 0x1ca   : > { %1271 = vadd.xlane.f32.xlu0 %v1788_v1  ;;  %1182 = vadd.xlane.f32.xlu1 %v1163_v31  ;;  %v1146_v1 = vld [vmem:[#allocation2 + $0x10] sm:$0xff] }
 0x1cb   : > { %v1150_v31 = vld [vmem:[#allocation2 + $0x30] sm:$0xff] }
 0x1d1   : > { %1263 = vadd.xlane.f32.xlu2 %v1786_v47 }
 0x1d2   : > { %1198 = vadd.xlane.f32.xlu0 %v1171_v33  ;;  %1279 = vadd.xlane.f32.xlu1 %v1790_v38 }
 0x1d9   : > { %1190 = vadd.xlane.f32.xlu2 %v1167_v10 }
 0x1da   : > { %1283 = vadd.xlane.f32.xlu0 %v3037_v26  ;;  %1206 = vadd.xlane.f32.xlu1 %v1175_v40  ;;  %v1145_v26 = vld [vmem:[#allocation2 + $0x8] sm:$0xff]  ;;  %v1154_v40 = vld [vmem:[#allocation2 + $0x50] sm:$0xff] }
 0x1e1   : > { %1287 = vadd.xlane.f32.xlu2 %v1792_v18 }
 0x1e2   : > { %1285 = vadd.xlane.f32.xlu1 %v1784_v11  ;;  %v1247_v11 = vld [vmem:[#allocation3 + $0x30] sm:$0xff] }
 0x204   : > { %v1258_v45 = vpop.xlane.xlu2 %1257 }
 0x205   : > { %v1289_v23 = vadd.f32 %v1258_v45, %v1241_v20  ;;  %v1266_v4 = vpop.xlane.xlu0 %1265  ;;  %v1177_v8 = vpop.xlane.xlu1 %1176  ;;  %v1248_v20 = vld [vmem:[#allocation3 + $0x38] sm:$0xff] }
 0x206   : > { %v1293_v35 = vadd.f32 %v1266_v4, %v1245_v36  ;;  %v1208_v52 = vadd.f32 %v1177_v8, %v1144_v60  ;;  %v1147_v36 = vld [vmem:[#allocation2 + $0x18] sm:$0xff] }
 0x207   : > { %1305 = vst.msk [vmem:[#allocation3] sm:$0xff] %vm1224_vm1, %v1289_v23 }
 0x208   : > { %1309 = vst.msk [vmem:[#allocation3 + $0x20] sm:$0xff] %vm1224_vm1, %v1293_v35 }
 0x209   : > { %1225 = vst.msk [vmem:[#allocation2] sm:$0xff] %vm1224_vm1, %v1208_v52  ;;  %v1244_v52 = vld [vmem:[#allocation3 + $0x18] sm:$0xff] }
 0x20c   : > { %v1185_v51 = vpop.xlane.xlu2 %1184 }
 0x20d   : > { %v1212_v19 = vadd.f32 %v1185_v51, %v1148_v54  ;;  %v1193_v39 = vpop.xlane.xlu0 %1192  ;;  %v1274_v28 = vpop.xlane.xlu1 %1273  ;;  %v1155_v54 = vld [vmem:[#allocation2 + $0x58] sm:$0xff] }
 0x20e   : > { %v1216_v16 = vadd.f32 %v1193_v39, %v1152_v61  ;;  %v1297_v58 = vadd.f32 %v1274_v28, %v1249_v14  ;;  %v1252_v61 = vld [vmem:[#allocation3 + $0x58] sm:$0xff] }
 0x20f   : > { %1229 = vst.msk [vmem:[#allocation2 + $0x20] sm:$0xff] %vm1224_vm1, %v1212_v19 }
 0x210   : > { %1233 = vst.msk [vmem:[#allocation2 + $0x40] sm:$0xff] %vm1224_vm1, %v1216_v16 }
 0x211   : > { %1313 = vst.msk [vmem:[#allocation3 + $0x40] sm:$0xff] %vm1224_vm1, %v1297_v58  ;;  %v1151_v58 = vld [vmem:[#allocation2 + $0x38] sm:$0xff] }
 0x214   : > { %v1282_v15 = vpop.xlane.xlu2 %1281 }
 0x215   : > { %v1301_v6 = vadd.f32 %v1282_v15, %v1253_v42  ;;  %v1260_v3 = vpop.xlane.xlu0 %1259  ;;  %v1201_v12 = vpop.xlane.xlu1 %1200  ;;  %v1254_v42 = vld [vmem:[#allocation3 + $0x68] sm:$0xff] }
 0x216   : > { %v1290_v22 = vadd.f32 %v1260_v3, %v1242_v41  ;;  %v1220_v29 = vadd.f32 %v1201_v12, %v1156_v24  ;;  %v1159_v41 = vld [vmem:[#allocation2 + $0x78] sm:$0xff] }
 0x217   : > { %1317 = vst.msk [vmem:[#allocation3 + $0x60] sm:$0xff] %vm1224_vm1, %v1301_v6 }
 0x218   : > { %1306 = vst.msk [vmem:[#allocation3 + $0x8] sm:$0xff] %vm1224_vm1, %v1290_v22 }
 0x219   : > { %1237 = vst.msk [vmem:[#allocation2 + $0x60] sm:$0xff] %vm1224_vm1, %v1220_v29  ;;  %v1256_v29 = vld [vmem:[#allocation3 + $0x78] sm:$0xff] }
 0x21c   : > { %v1276_v0 = vpop.xlane.xlu2 %1275 }
 0x21d   : > { %v1298_v50 = vadd.f32 %v1276_v0, %v1250_v27  ;;  %v1179_v44 = vpop.xlane.xlu0 %1178  ;;  %v1268_v5 = vpop.xlane.xlu1 %1267  ;;  %v1255_v27 = vld [vmem:[#allocation3 + $0x70] sm:$0xff] }
 0x21e   : > { %v1209_v37 = vadd.f32 %v1179_v44, %v1145_v26  ;;  %v1294_v53 = vadd.f32 %v1268_v5, %v1246_v46 }
 0x21f   : > { %1314 = vst.msk [vmem:[#allocation3 + $0x48] sm:$0xff] %vm1224_vm1, %v1298_v50 }
 0x220   : > { %1226 = vst.msk [vmem:[#allocation2 + $0x8] sm:$0xff] %vm1224_vm1, %v1209_v37 }
 0x221   : > { %1310 = vst.msk [vmem:[#allocation3 + $0x28] sm:$0xff] %vm1224_vm1, %v1294_v53 }
 0x224   : > { %v1203_v32 = vpop.xlane.xlu2 %1202 }
 0x225   : > { %v1221_v21 = vadd.f32 %v1203_v32, %v1157_v30  ;;  %v1187_v59 = vpop.xlane.xlu0 %1186  ;;  %v1195_v17 = vpop.xlane.xlu1 %1194 }
 0x226   : > { %v1213_v48 = vadd.f32 %v1187_v59, %v1149_v57  ;;  %v1217_v2 = vadd.f32 %v1195_v17, %v1153_v55 }
 0x227   : > { %1238 = vst.msk [vmem:[#allocation2 + $0x68] sm:$0xff] %vm1224_vm1, %v1221_v21 }
 0x228   : > { %1230 = vst.msk [vmem:[#allocation2 + $0x28] sm:$0xff] %vm1224_vm1, %v1213_v48 }
 0x229   : > { %1234 = vst.msk [vmem:[#allocation2 + $0x48] sm:$0xff] %vm1224_vm1, %v1217_v2 }
 0x22c   : > { %v1270_v49 = vpop.xlane.xlu2 %1269 }
 0x22d   : > { %v1295_v63 = vadd.f32 %v1270_v49, %v1247_v11  ;;  %v1278_v62 = vpop.xlane.xlu0 %1277  ;;  %v1262_v56 = vpop.xlane.xlu1 %1261 }
 0x22e   : > { %v1299_v47 = vadd.f32 %v1278_v62, %v1251_v34  ;;  %v1291_v13 = vadd.f32 %v1262_v56, %v1243_v43 }
 0x22f   : > { %1311 = vst.msk [vmem:[#allocation3 + $0x30] sm:$0xff] %vm1224_vm1, %v1295_v63 }
 0x230   : > { %1315 = vst.msk [vmem:[#allocation3 + $0x50] sm:$0xff] %vm1224_vm1, %v1299_v47 }
 0x231   : > { %1307 = vst.msk [vmem:[#allocation3 + $0x10] sm:$0xff] %vm1224_vm1, %v1291_v13 }
 0x234   : > { %v1181_v7 = vpop.xlane.xlu2 %1180 }
 0x235   : > { %v1210_v38 = vadd.f32 %v1181_v7, %v1146_v1  ;;  %v1205_v33 = vpop.xlane.xlu0 %1204  ;;  %v1189_v9 = vpop.xlane.xlu1 %1188 }
 0x236   : > { %v1222_v18 = vadd.f32 %v1205_v33, %v1158_v25  ;;  %v1214_v10 = vadd.f32 %v1189_v9, %v1150_v31 }
 0x237   : > { %1227 = vst.msk [vmem:[#allocation2 + $0x10] sm:$0xff] %vm1224_vm1, %v1210_v38 }
 0x238   : > { %1239 = vst.msk [vmem:[#allocation2 + $0x70] sm:$0xff] %vm1224_vm1, %v1222_v18 }
 0x239   : > { %1231 = vst.msk [vmem:[#allocation2 + $0x30] sm:$0xff] %vm1224_vm1, %v1214_v10 }
 0x23c   : > { %v1197_v60 = vpop.xlane.xlu2 %1196 }
 0x23d   : > { %v1218_v45 = vadd.f32 %v1197_v60, %v1154_v40  ;;  %v1272_v23 = vpop.xlane.xlu0 %1271  ;;  %v1183_v4 = vpop.xlane.xlu1 %1182 }
 0x23e   : > { %v1296_v8 = vadd.f32 %v1272_v23, %v1248_v20  ;;  %v1211_v35 = vadd.f32 %v1183_v4, %v1147_v36 }
 0x23f   : > { %1235 = vst.msk [vmem:[#allocation2 + $0x50] sm:$0xff] %vm1224_vm1, %v1218_v45 }
 0x240   : > { %1312 = vst.msk [vmem:[#allocation3 + $0x38] sm:$0xff] %vm1224_vm1, %v1296_v8 }
 0x241   : > { %1228 = vst.msk [vmem:[#allocation2 + $0x18] sm:$0xff] %vm1224_vm1, %v1211_v35 }
 0x244   : > { %v1264_v14 = vpop.xlane.xlu2 %1263 }
 0x245   : > { %v1292_v51 = vadd.f32 %v1264_v14, %v1244_v52  ;;  %v1199_v19 = vpop.xlane.xlu0 %1198  ;;  %v1280_v39 = vpop.xlane.xlu1 %1279 }
 0x246   : > { %v1219_v28 = vadd.f32 %v1199_v19, %v1155_v54  ;;  %v1300_v16 = vadd.f32 %v1280_v39, %v1252_v61 }
 0x247   : > { %1308 = vst.msk [vmem:[#allocation3 + $0x18] sm:$0xff] %vm1224_vm1, %v1292_v51 }
 0x248   : > { %1236 = vst.msk [vmem:[#allocation2 + $0x58] sm:$0xff] %vm1224_vm1, %v1219_v28 }
 0x249   : > { %1316 = vst.msk [vmem:[#allocation3 + $0x58] sm:$0xff] %vm1224_vm1, %v1300_v16 }
 0x24c   : > { %v1191_v24 = vpop.xlane.xlu2 %1190 }
 0x24d   : > { %v1215_v15 = vadd.f32 %v1191_v24, %v1151_v58  ;;  %v1284_v6 = vpop.xlane.xlu0 %1283  ;;  %v1207_v3 = vpop.xlane.xlu1 %1206 }
 0x24e   : > { %v1302_v12 = vadd.f32 %v1284_v6, %v1254_v42  ;;  %v1223_v22 = vadd.f32 %v1207_v3, %v1159_v41 }
 0x24f   : > { %1232 = vst.msk [vmem:[#allocation2 + $0x38] sm:$0xff] %vm1224_vm1, %v1215_v15 }
 0x250   : > { %1318 = vst.msk [vmem:[#allocation3 + $0x68] sm:$0xff] %vm1224_vm1, %v1302_v12 }
 0x251   : > { %1240 = vst.msk [vmem:[#allocation2 + $0x78] sm:$0xff] %vm1224_vm1, %v1223_v22 }
 0x254   : > { %v1288_v26 = vpop.xlane.xlu2 %1287  ;;  %1324 = sbr.rel (%p1600_p9) target bundleno = 645 (0x285), region = 44 }
 0x255   : > { %v1304_v46 = vadd.f32 %v1288_v26, %v1256_v29  ;;  %v1286_v0 = vpop.xlane.xlu1 %1285 }
 0x256   : > { %v1303_v50 = vadd.f32 %v1286_v0, %v1255_v27 }
 0x257   : > { %1320 = vst.msk [vmem:[#allocation3 + $0x78] sm:$0xff] %vm1224_vm1, %v1304_v46 }
 0x258   : > { %1319 = vst.msk [vmem:[#allocation3 + $0x70] sm:$0xff] %vm1224_vm1, %v1303_v50 }
 0x259   : > { %v1325_v44 = vld [vmem:[#allocation3] sm:$0xff]  ;;  %v1326_v37 = vld [vmem:[#allocation3 + $0x8] sm:$0xff]  ;;  %v1327_v30 = vld [vmem:[#allocation3 + $0x10] sm:$0xff] }
 0x25a   : > { %v1373_v5 = vld [vmem:[#allocation2] sm:$0xff]  ;;  %1808 = vlog2.f32 %v1325_v44  ;;  %v1374_v53 = vld [vmem:[#allocation2 + $0x8] sm:$0xff]  ;;  %v1375_v57 = vld [vmem:[#allocation2 + $0x10] sm:$0xff] }
 0x25b   : > { %1810 = vlog2.f32 %v1373_v5  ;;  %v1328_v55 = vld [vmem:[#allocation3 + $0x18] sm:$0xff]  ;;  %v1329_v21 = vld [vmem:[#allocation3 + $0x20] sm:$0xff]  ;;  %v1330_v11 = vld [vmem:[#allocation3 + $0x28] sm:$0xff] }
 0x25c   : > { %1812 = vlog2.f32 %v1326_v37  ;;  %v1376_v32 = vld [vmem:[#allocation2 + $0x18] sm:$0xff]  ;;  %v1377_v17 = vld [vmem:[#allocation2 + $0x20] sm:$0xff]  ;;  %v1378_v49 = vld [vmem:[#allocation2 + $0x28] sm:$0xff] }
 0x25d   : > { %1814 = vlog2.f32 %v1374_v53  ;;  %v1331_v56 = vld [vmem:[#allocation3 + $0x30] sm:$0xff]  ;;  %v1332_v38 = vld [vmem:[#allocation3 + $0x38] sm:$0xff]  ;;  %v1333_v36 = vld [vmem:[#allocation3 + $0x40] sm:$0xff] }
 0x25e   : > { %1816 = vlog2.f32 %v1327_v30  ;;  %v1379_v25 = vld [vmem:[#allocation2 + $0x30] sm:$0xff]  ;;  %v1380_v10 = vld [vmem:[#allocation2 + $0x38] sm:$0xff]  ;;  %v1381_v4 = vld [vmem:[#allocation2 + $0x40] sm:$0xff] }
 0x25f   : > { %1818 = vlog2.f32 %v1375_v57  ;;  %v1334_v52 = vld [vmem:[#allocation3 + $0x48] sm:$0xff]  ;;  %v1335_v28 = vld [vmem:[#allocation3 + $0x50] sm:$0xff]  ;;  %v1336_v6 = vld [vmem:[#allocation3 + $0x58] sm:$0xff] }
 0x260   : > { %v1809_v59 = vpop.eup %1808  ;;  %1820 = vlog2.f32 %v1328_v55  ;;  %v1382_v51 = vld [vmem:[#allocation2 + $0x48] sm:$0xff]  ;;  %v1383_v41 = vld [vmem:[#allocation2 + $0x50] sm:$0xff]  ;;  %v1384_v29 = vld [vmem:[#allocation2 + $0x58] sm:$0xff] }
 0x261   : > { %v1811_v48 = vpop.eup %1810  ;;  %v1342_v2 = vmul.f32 0.6931472, %v1809_v59  ;;  %1822 = vlog2.f32 %v1376_v32  ;;  %v1337_v46 = vld [vmem:[#allocation3 + $0x60] sm:$0xff]  ;;  %v1338_v30 = vld [vmem:[#allocation3 + $0x68] sm:$0xff] }
 0x262   : > { %v1813_v34 = vpop.eup %1812  ;;  %v1390_v43 = vmul.f32 0.6931472, %v1811_v48  ;;  %1824 = vlog2.f32 %v1329_v21  ;;  %v1385_v5 = vld [vmem:[#allocation2 + $0x60] sm:$0xff]  ;;  %v1386_v21 = vld [vmem:[#allocation2 + $0x68] sm:$0xff]  ;;  %v1339_v48 = vld [vmem:[#allocation3 + $0x70] sm:$0xff] }
 0x263   : > { %v1815_v63 = vpop.eup %1814  ;;  %v1344_v62 = vmul.f32 0.6931472, %v1813_v34  ;;  %1826 = vlog2.f32 %v1377_v17 }
 0x264   : > { %v1817_v47 = vpop.eup %1816  ;;  %v1421_v13 = vsub.f32 %v1342_v2, %v1390_v43  ;;  %v1392_v1 = vmul.f32 0.6931472, %v1815_v63  ;;  %1828 = vlog2.f32 %v1330_v11  ;;  %v1387_v43 = vld [vmem:[#allocation2 + $0x70] sm:$0xff] }
 0x265   : > { %v1819_v31 = vpop.eup %1818  ;;  %v1346_v7 = vmul.f32 0.6931472, %v1817_v47  ;;  %1830 = vlog2.f32 %v1378_v49 }
 0x266   : > { %v1821_v33 = vpop.eup %1820  ;;  %1437 = vst.msk [vmem:[%s1994_s12] sm:$0xff] %vm1224_vm1, %v1421_v13  ;;  %v1422_v9 = vsub.f32 %v1344_v62, %v1392_v1  ;;  %v1394_v18 = vmul.f32 0.6931472, %v1819_v31  ;;  %1832 = vlog2.f32 %v1331_v56  ;;  %v1340_v62 = vld [vmem:[#allocation3 + $0x78] sm:$0xff] }
 0x267   : > { %v1823_v40 = vpop.eup %1822  ;;  %v1348_v20 = vmul.f32 0.6931472, %v1821_v33  ;;  %1834 = vlog2.f32 %v1379_v25  ;;  %v1388_v1 = vld [vmem:[#allocation2 + $0x78] sm:$0xff] }
 0x268   : > { %v1825_v60 = vpop.eup %1824  ;;  %1438 = vst.msk [vmem:[%s1994_s12 + $0x8] sm:$0xff] %vm1224_vm1, %v1422_v9  ;;  %v1423_v45 = vsub.f32 %v1346_v7, %v1394_v18  ;;  %v1396_v23 = vmul.f32 0.6931472, %v1823_v40  ;;  %1836 = vlog2.f32 %v1332_v38 }
 0x269   : > { %v1827_v8 = vpop.eup %1826  ;;  %v1350_v35 = vmul.f32 0.6931472, %v1825_v60  ;;  %1838 = vlog2.f32 %v1380_v10 }
 0x26a   : > { %v1829_v54 = vpop.eup %1828  ;;  %1439 = vst.msk [vmem:[%s1994_s12 + $0x10] sm:$0xff] %vm1224_vm1, %v1423_v45  ;;  %v1424_v61 = vsub.f32 %v1348_v20, %v1396_v23  ;;  %v1398_v14 = vmul.f32 0.6931472, %v1827_v8  ;;  %1840 = vlog2.f32 %v1333_v36 }
 0x26b   : > { %v1831_v19 = vpop.eup %1830  ;;  %v1352_v39 = vmul.f32 0.6931472, %v1829_v54  ;;  %1842 = vlog2.f32 %v1381_v4 }
 0x26c   : > { %v1833_v16 = vpop.eup %1832  ;;  %1440 = vst.msk [vmem:[%s1994_s12 + $0x18] sm:$0xff] %vm1224_vm1, %v1424_v61  ;;  %v1425_v58 = vsub.f32 %v1350_v35, %v1398_v14  ;;  %v1400_v42 = vmul.f32 0.6931472, %v1831_v19  ;;  %1844 = vlog2.f32 %v1334_v52 }
 0x26d   : > { %v1835_v24 = vpop.eup %1834  ;;  %v1354_v15 = vmul.f32 0.6931472, %v1833_v16  ;;  %1846 = vlog2.f32 %v1382_v51 }
 0x26e   : > { %v1837_v3 = vpop.eup %1836  ;;  %1441 = vst.msk [vmem:[%s1994_s12 + $0x20] sm:$0xff] %vm1224_vm1, %v1425_v58  ;;  %v1426_v12 = vsub.f32 %v1352_v39, %v1400_v42  ;;  %v1402_v22 = vmul.f32 0.6931472, %v1835_v24  ;;  %1848 = vlog2.f32 %v1335_v28 }
 0x26f   : > { %v1839_v27 = vpop.eup %1838  ;;  %v1356_v26 = vmul.f32 0.6931472, %v1837_v3  ;;  %1850 = vlog2.f32 %v1383_v41 }
 0x270   : > { %v1841_v0 = vpop.eup %1840  ;;  %1442 = vst.msk [vmem:[%s1994_s12 + $0x28] sm:$0xff] %vm1224_vm1, %v1426_v12  ;;  %v1427_v50 = vsub.f32 %v1354_v15, %v1402_v22  ;;  %v1404_v44 = vmul.f32 0.6931472, %v1839_v27  ;;  %1852 = vlog2.f32 %v1336_v6 }
 0x271   : > { %v1843_v37 = vpop.eup %1842  ;;  %v1358_v53 = vmul.f32 0.6931472, %v1841_v0  ;;  %1854 = vlog2.f32 %v1384_v29 }
 0x272   : > { %v1845_v57 = vpop.eup %1844  ;;  %1443 = vst.msk [vmem:[%s1994_s12 + $0x30] sm:$0xff] %vm1224_vm1, %v1427_v50  ;;  %v1428_v55 = vsub.f32 %v1356_v26, %v1404_v44  ;;  %v1406_v32 = vmul.f32 0.6931472, %v1843_v37  ;;  %1856 = vlog2.f32 %v1337_v46 }
 0x273   : > { %v1847_v59 = vpop.eup %1846  ;;  %v1360_v17 = vmul.f32 0.6931472, %v1845_v57  ;;  %1858 = vlog2.f32 %v1385_v5 }
 0x274   : > { %v1849_v2 = vpop.eup %1848  ;;  %1444 = vst.msk [vmem:[%s1994_s12 + $0x38] sm:$0xff] %vm1224_vm1, %v1428_v55  ;;  %v1429_v11 = vsub.f32 %v1358_v53, %v1406_v32  ;;  %v1408_v34 = vmul.f32 0.6931472, %v1847_v59  ;;  %1860 = vlog2.f32 %v1338_v30 }
 0x275   : > { %v1851_v49 = vpop.eup %1850  ;;  %v1362_v63 = vmul.f32 0.6931472, %v1849_v2  ;;  %1862 = vlog2.f32 %v1386_v21 }
 0x276   : > { %v1853_v56 = vpop.eup %1852  ;;  %1445 = vst.msk [vmem:[%s1994_s12 + $0x40] sm:$0xff] %vm1224_vm1, %v1429_v11  ;;  %v1430_v47 = vsub.f32 %v1360_v17, %v1408_v34  ;;  %v1410_v13 = vmul.f32 0.6931472, %v1851_v49  ;;  %1864 = vlog2.f32 %v1339_v48 }
 0x277   : > { %v1855_v25 = vpop.eup %1854  ;;  %v1364_v31 = vmul.f32 0.6931472, %v1853_v56  ;;  %1866 = vlog2.f32 %v1387_v43 }
 0x278   : > { %v1857_v7 = vpop.eup %1856  ;;  %1446 = vst.msk [vmem:[%s1994_s12 + $0x48] sm:$0xff] %vm1224_vm1, %v1430_v47  ;;  %v1431_v38 = vsub.f32 %v1362_v63, %v1410_v13  ;;  %v1412_v33 = vmul.f32 0.6931472, %v1855_v25  ;;  %1868 = vlog2.f32 %v1340_v62 }
 0x279   : > { %v1859_v9 = vpop.eup %1858  ;;  %v1366_v18 = vmul.f32 0.6931472, %v1857_v7  ;;  %1870 = vlog2.f32 %v1388_v1 }
 0x27a   : > { %v1861_v10 = vpop.eup %1860  ;;  %1447 = vst.msk [vmem:[%s1994_s12 + $0x50] sm:$0xff] %vm1224_vm1, %v1431_v38  ;;  %v1432_v40 = vsub.f32 %v1364_v31, %v1412_v33  ;;  %v1414_v20 = vmul.f32 0.6931472, %v1859_v9 }
 0x27b   : > { %v1863_v36 = vpop.eup %1862  ;;  %v1368_v60 = vmul.f32 0.6931472, %v1861_v10 }
 0x27c   : > { %v1865_v45 = vpop.eup %1864  ;;  %1448 = vst.msk [vmem:[%s1994_s12 + $0x58] sm:$0xff] %vm1224_vm1, %v1432_v40  ;;  %v1433_v23 = vsub.f32 %v1366_v18, %v1414_v20  ;;  %v1416_v4 = vmul.f32 0.6931472, %v1863_v36 }
 0x27d   : > { %v1867_v8 = vpop.eup %1866  ;;  %v1370_v35 = vmul.f32 0.6931472, %v1865_v45 }
 0x27e   : > { %v1869_v52 = vpop.eup %1868  ;;  %1449 = vst.msk [vmem:[%s1994_s12 + $0x60] sm:$0xff] %vm1224_vm1, %v1433_v23  ;;  %v1434_v54 = vsub.f32 %v1368_v60, %v1416_v4  ;;  %v1418_v61 = vmul.f32 0.6931472, %v1867_v8 }
 0x27f   : > { %v1871_v14 = vpop.eup %1870  ;;  %v1372_v51 = vmul.f32 0.6931472, %v1869_v52 }
 0x280   : > { %1450 = vst.msk [vmem:[%s1994_s12 + $0x68] sm:$0xff] %vm1224_vm1, %v1434_v54  ;;  %v1435_v19 = vsub.f32 %v1370_v35, %v1418_v61  ;;  %v1420_v39 = vmul.f32 0.6931472, %v1871_v14 }
 0x282   : > { %1451 = vst.msk [vmem:[%s1994_s12 + $0x70] sm:$0xff] %vm1224_vm1, %v1435_v19  ;;  %v1436_v28 = vsub.f32 %v1372_v51, %v1420_v39 }
 0x284   : > { %1452 = vst.msk [vmem:[%s1994_s12 + $0x78] sm:$0xff] %vm1224_vm1, %v1436_v28 }
 0x285 PF: > { %s14_s19 = sadd.s32 1, %s1910_s19   ;;  %s3204_s15 = smov %s1902_s17 }
 0x286   : > { %p11_p10 = scmp.ge.s32.totalorder %s14_s19, 6   ;;  %s3205_s16 = smov %s1906_s18 }
 0x287   : > { %s3206_s17 = smov %s3209_s20  ;;  %s3207_s18 = smov %s3213_s21 }
 0x288   :  { %13 = sbr.rel (!%p11_p10) target bundleno = 3 (0x3), region = 83 }

</bundles_post_ra>
